<compile_context>
chip_gen: v6e
topology: v6e:2x2x1
jax: 0.10.0
libtpu: 0.0.40
codegen_flags: <defaults>
</compile_context>

<pallas_src>
import functools
import math

import jax
import jax.numpy as jnp
from jax.experimental import pallas as pl
from jax.experimental.pallas import tpu as pltpu

# ---------------- small, self-consistent BERT-style config ------------------
VOCAB = 100
MAX_POS = 16
HIDDEN = 32
N_HEADS = 2
HEAD_DIM = HIDDEN // N_HEADS
N_LAYERS = 2
INTERMEDIATE = 64
N_CLASSES = 3
LN_EPS = 1e-12
LANE = 128  # lane-padded width for small-param slabs / classifier-head output


# ------------------------------- fused kernel --------------------------------
def _bert_forward_kernel(
    emb_ref, mask_ref, small_g_ref, small_l_ref,
    w_in_ref, fc2_w_ref, w_head_ref,
    logits_ref,                       # output: [B, LANE] lane-padded logits
    *, n_layers, n_heads, head_dim, inter, batch, seq, eps):
    hidden = n_heads * head_dim
    scale = 1.0 / math.sqrt(head_dim)

    def layernorm(x, g, b):
        mu = jnp.mean(x, axis=-1, keepdims=True)
        var = jnp.mean((x - mu) ** 2, axis=-1, keepdims=True)
        return (x - mu) * jax.lax.rsqrt(var + eps) * g + b

    def mm(a, w):
        # bf16 MXU operands, f32 accumulation.
        return jnp.dot(a.astype(jnp.bfloat16), w.astype(jnp.bfloat16),
                       preferred_element_type=jnp.float32)

    sg = small_g_ref[...]             # [4, LANE]  f32 small globals
    mask_bias = mask_ref[...]         # [B*S, B*S] additive attention mask

    # --- BERT embeddings LayerNorm (no residual) ---
    x = layernorm(emb_ref[...], sg[0:1, :hidden], sg[1:2, :hidden])  # [B*S, H]

    for l in range(n_layers):
        w_l = w_in_ref[l]             # [H, 3H + H + I] bf16 (qkv_w | ao_w | fc1_w)
        sl = small_l_ref[l]           # [8, LANE] f32 per-layer biases / LN params

        # Fused QKV projection: one MXU pass -> [B*S, 3H].
        qkv = mm(x, w_l[:, :3 * hidden]) + sl[0:1, :3 * hidden]

        # All batch rows at once per head: [B*S, B*S] scores with a
        # block-diagonal + key-padding mask (exp(-1e4) == 0 exactly in f32,
        # so this equals the per-batch softmax).  Context stays in registers.
        ctx_heads = []
        for h in range(n_heads):
            c0 = h * head_dim
            q = qkv[:, c0:c0 + head_dim]
            k = qkv[:, hidden + c0:hidden + c0 + head_dim]
            v = qkv[:, 2 * hidden + c0:2 * hidden + c0 + head_dim]
            s = jax.lax.dot_general(
                q.astype(jnp.bfloat16), k.astype(jnp.bfloat16),
                dimension_numbers=(((1,), (1,)), ((), ())),
                preferred_element_type=jnp.float32) * scale + mask_bias
            s = s - jnp.max(s, axis=-1, keepdims=True)
            p = jnp.exp(s)
            p = p * pl.reciprocal(jnp.sum(p, axis=-1, keepdims=True),
                                  approx=True)
            ctx_heads.append(mm(p, v))                       # [B*S, Dh]
        ctx = jnp.concatenate(ctx_heads, axis=-1)            # [B*S, H]

        # Attention output projection + Add&LayerNorm.
        attn_out = mm(ctx, w_l[:, 3 * hidden:4 * hidden]) + sl[1:2, :hidden]
        x = layernorm(attn_out + x, sl[2:3, :hidden], sl[3:4, :hidden])

        # Feed-forward: GELU(x W1 + b1) W2 + b2, then Add&LayerNorm.
        h1 = mm(x, w_l[:, 4 * hidden:4 * hidden + inter]) + sl[4:5, :inter]
        # TODO(synk): HF BERT default is exact erf-GELU; tanh approximation used here.
        h1 = 0.5 * h1 * (1.0 + jnp.tanh(0.7978845608028654
                                        * (h1 + 0.044715 * h1 * h1 * h1)))
        h2 = mm(h1, fc2_w_ref[l]) + sl[5:6, :hidden]
        x = layernorm(h2 + x, sl[6:7, :hidden], sl[7:8, :hidden])

    # --- BERT pooler: tanh(W * hidden[:, 0, :] + b); CLS rows gathered in-register.
    cls = jnp.concatenate([x[b * seq:b * seq + 1, :] for b in range(batch)],
                          axis=0)                             # [B, H]
    wh = w_head_ref[...]                                      # [H, H + LANE] bf16
    pooled = jnp.tanh(mm(cls, wh[:, :hidden]) + sg[2:3, :hidden])

    # nn.Dropout(p=0.3): identity at inference.  Lane-padded classifier head.
    logits_ref[...] = mm(pooled, wh[:, hidden:]) + sg[3:4, :]


def _resident(shape):
    """Full-array, VMEM-resident BlockSpec for a single-step grid."""
    nd = len(shape)
    return pl.BlockSpec(tuple(shape), lambda i, _nd=nd: (0,) * _nd)


# ------------------------------ model glue -----------------------------------
def sentiment_classifier_forward(params, input_ids, attention_mask):
    """Equivalent of SentimentClassifier.forward -> logits [B, n_classes]."""
    B, S = input_ids.shape
    assert S <= MAX_POS, f"sequence length {S} exceeds MAX_POS={MAX_POS}"
    H, I, L = HIDDEN, INTERMEDIATE, N_LAYERS

    # Embedding gathers stay as plain-JAX glue feeding the fused kernel.
    we = params["word_emb"][input_ids]                 # [B,S,H]
    pe = params["pos_emb"][:S][None, :, :]             # [1,S,H]
    te = params["type_emb"][0][None, None, :]          # token_type_ids == 0
    emb = (we + pe + te).reshape(B * S, H).astype(jnp.float32)

    # Block-diagonal + key-padding additive mask over the flattened
    # [B*S, B*S] score matrix: 0 where attendable, -10000 otherwise.
    row_batch = jnp.repeat(jnp.arange(B), S)
    same_batch = (row_batch[:, None] == row_batch[None, :]).astype(jnp.float32)
    key_valid = attention_mask.reshape(B * S).astype(jnp.float32)
    mask_bias = (1.0 - same_batch * key_valid[None, :]) * -10000.0   # [BS,BS]

    def row(v):        # pad a small vector to one [1, LANE] row
        v = v.reshape(1, -1)
        return jnp.pad(v, ((0, 0), (0, LANE - v.shape[1])))

    def lrows(v):      # pad a [L, 1, w] per-layer vector stack to [L, 1, LANE]
        v = v.reshape(L, 1, -1)
        return jnp.pad(v, ((0, 0), (0, 0), (0, LANE - v.shape[-1])))

    # Small-parameter slabs: 12 tiny arrays -> 2 DMAs.
    small_g = jnp.concatenate(
        [row(params["emb_ln_g"]), row(params["emb_ln_b"]),
         row(params["pooler_b"]), row(params["out_b"])], axis=0)      # [4, LANE]
    small_l = jnp.concatenate(
        [lrows(params["qkv_b"]), lrows(params["ao_b"]),
         lrows(params["ln1_g"]), lrows(params["ln1_b"]),
         lrows(params["fc1_b"]), lrows(params["fc2_b"]),
         lrows(params["ln2_g"]), lrows(params["ln2_b"])], axis=1)     # [L,8,LANE]

    # Weight slabs (bf16 MXU operands): 6 matrices -> 3 DMAs.
    w_in = jnp.concatenate(
        [params["qkv_w"], params["ao_w"], params["fc1_w"]],
        axis=-1).astype(jnp.bfloat16)                                 # [L,H,3H+H+I]
    fc2_w = params["fc2_w"].astype(jnp.bfloat16)                      # [L,I,H]
    out_w_pad = jnp.zeros((H, LANE), jnp.float32).at[:, :N_CLASSES].set(
        params["out_w"])
    w_head = jnp.concatenate([params["pooler_w"], out_w_pad],
                             axis=-1).astype(jnp.bfloat16)            # [H,H+LANE]

    inputs = (emb, mask_bias, small_g, small_l, w_in, fc2_w, w_head)

    kernel = functools.partial(
        _bert_forward_kernel, n_layers=L, n_heads=N_HEADS, head_dim=HEAD_DIM,
        inter=I, batch=B, seq=S, eps=LN_EPS)

    logits_pad = pl.pallas_call(
        kernel,
        grid=(1,),
        out_shape=jax.ShapeDtypeStruct((B, LANE), jnp.float32),
        in_specs=[_resident(t.shape) for t in inputs],
        out_specs=pl.BlockSpec((B, LANE), lambda i: (0, 0)),
        compiler_params=pltpu.CompilerParams(
            dimension_semantics=("arbitrary",)),
    )(*inputs)

    return logits_pad[:, :N_CLASSES]


def init_params(key):
    keys = iter(jax.random.split(key, 32))

    def nrm(shape):
        return 0.02 * jax.random.normal(next(keys), shape, jnp.float32)

    L, H, I = N_LAYERS, HIDDEN, INTERMEDIATE
    return {
        "word_emb": nrm((VOCAB, H)),
        "pos_emb": nrm((MAX_POS, H)),
        "type_emb": nrm((2, H)),
        "emb_ln_g": jnp.ones((1, H), jnp.float32),
        "emb_ln_b": jnp.zeros((1, H), jnp.float32),
        # Per-layer weights stacked on a leading layer axis (VMEM-resident).
        "qkv_w": nrm((L, H, 3 * H)),
        "qkv_b": jnp.zeros((L, 1, 3 * H), jnp.float32),
        "ao_w": nrm((L, H, H)),
        "ao_b": jnp.zeros((L, 1, H), jnp.float32),
        "ln1_g": jnp.ones((L, 1, H), jnp.float32),
        "ln1_b": jnp.zeros((L, 1, H), jnp.float32),
        "fc1_w": nrm((L, H, I)),
        "fc1_b": jnp.zeros((L, 1, I), jnp.float32),
        "fc2_w": nrm((L, I, H)),
        "fc2_b": jnp.zeros((L, 1, H), jnp.float32),
        "ln2_g": jnp.ones((L, 1, H), jnp.float32),
        "ln2_b": jnp.zeros((L, 1, H), jnp.float32),
        "pooler_w": nrm((H, H)),
        "pooler_b": jnp.zeros((1, H), jnp.float32),
        "out_w": nrm((H, N_CLASSES)),
        "out_b": jnp.zeros((N_CLASSES,), jnp.float32),
    }


if __name__ == "__main__":
    B, S = 2, 8
    key = jax.random.PRNGKey(0)
    pkey, ikey = jax.random.split(key)

    params = init_params(pkey)
    input_ids = jax.random.randint(ikey, (B, S), 0, VOCAB, dtype=jnp.int32)
    lengths = jnp.array([S, 5], dtype=jnp.int32)
    attention_mask = (jnp.arange(S)[None, :] < lengths[:, None]).astype(jnp.int32)

    forward = jax.jit(sentiment_classifier_forward)
    logits = forward(params, input_ids, attention_mask)
    logits = jax.block_until_ready(logits)
    assert logits.shape == (B, N_CLASSES)
    assert bool(jnp.all(jnp.isfinite(logits)))
    print("KERNEL_OK")
</pallas_src>

<mosaic_0001>
module attributes {stable_mosaic.version = 11 : i64} {
  func.func @_bert_forward_kernel(%arg0: i32, %arg1: memref<16x32xf32, #tpu.memory_space<vmem>>, %arg2: memref<16x16xf32, #tpu.memory_space<vmem>>, %arg3: memref<4x128xf32, #tpu.memory_space<vmem>>, %arg4: memref<2x8x128xf32, #tpu.memory_space<vmem>>, %arg5: memref<2x32x192xbf16, #tpu.memory_space<vmem>>, %arg6: memref<2x64x32xbf16, #tpu.memory_space<vmem>>, %arg7: memref<32x160xbf16, #tpu.memory_space<vmem>>, %arg8: memref<2x128xf32, #tpu.memory_space<vmem>>) attributes {dimension_semantics = [#tpu.dimension_semantics<arbitrary>], iteration_bounds = array<i64: 1>, scalar_prefetch = 0 : i64, scratch_operands = 0 : i64, tpu.core_type = #tpu.core_type<tc>, window_params = [{pipeline_mode = #tpu.pipeline_mode<synchronous>, transform_indices = @transform_0, window_bounds = array<i64: 16, 32>}, {pipeline_mode = #tpu.pipeline_mode<synchronous>, transform_indices = @transform_1, window_bounds = array<i64: 16, 16>}, {pipeline_mode = #tpu.pipeline_mode<synchronous>, transform_indices = @transform_2, window_bounds = array<i64: 4, 128>}, {pipeline_mode = #tpu.pipeline_mode<synchronous>, transform_indices = @transform_3, window_bounds = array<i64: 2, 8, 128>}, {pipeline_mode = #tpu.pipeline_mode<synchronous>, transform_indices = @transform_4, window_bounds = array<i64: 2, 32, 192>}, {pipeline_mode = #tpu.pipeline_mode<synchronous>, transform_indices = @transform_5, window_bounds = array<i64: 2, 64, 32>}, {pipeline_mode = #tpu.pipeline_mode<synchronous>, transform_indices = @transform_6, window_bounds = array<i64: 32, 160>}, {pipeline_mode = #tpu.pipeline_mode<synchronous>, transform_indices = @transform_7, window_bounds = array<i64: 2, 128>}]} {
    %c0 = arith.constant 0 : index
    %c0_0 = arith.constant 0 : index
    %0 = vector.load %arg3[%c0, %c0_0] : memref<4x128xf32, #tpu.memory_space<vmem>>, vector<4x128xf32>
    %c0_1 = arith.constant 0 : index
    %c0_2 = arith.constant 0 : index
    %1 = vector.load %arg2[%c0_1, %c0_2] : memref<16x16xf32, #tpu.memory_space<vmem>>, vector<16x16xf32>
    %c0_3 = arith.constant 0 : index
    %c0_4 = arith.constant 0 : index
    %2 = vector.load %arg1[%c0_3, %c0_4] : memref<16x32xf32, #tpu.memory_space<vmem>>, vector<16x32xf32>
    %3 = vector.extract_strided_slice %0 {offsets = [0, 0], sizes = [1, 32], strides = [1, 1]} : vector<4x128xf32> to vector<1x32xf32>
    %4 = vector.extract_strided_slice %0 {offsets = [1, 0], sizes = [1, 32], strides = [1, 1]} : vector<4x128xf32> to vector<1x32xf32>
    %cst = arith.constant dense<0.000000e+00> : vector<16xf32>
    %5 = vector.multi_reduction <add>, %2, %cst [1] : vector<16x32xf32> to vector<16xf32>
    %6 = vector.shape_cast %5 : vector<16xf32> to vector<16x1xf32>
    %cst_5 = arith.constant 3.200000e+01 : f32
    %7 = vector.broadcast %cst_5 : f32 to vector<16x1xf32>
    %8 = arith.divf %6, %7 : vector<16x1xf32>
    %9 = vector.broadcast %8 : vector<16x1xf32> to vector<16x32xf32>
    %10 = arith.subf %2, %9 : vector<16x32xf32>
    %11 = arith.mulf %10, %10 : vector<16x32xf32>
    %cst_6 = arith.constant dense<0.000000e+00> : vector<16xf32>
    %12 = vector.multi_reduction <add>, %11, %cst_6 [1] : vector<16x32xf32> to vector<16xf32>
    %13 = vector.shape_cast %12 : vector<16xf32> to vector<16x1xf32>
    %cst_7 = arith.constant 3.200000e+01 : f32
    %14 = vector.broadcast %cst_7 : f32 to vector<16x1xf32>
    %15 = arith.divf %13, %14 : vector<16x1xf32>
    %16 = vector.broadcast %8 : vector<16x1xf32> to vector<16x32xf32>
    %17 = arith.subf %2, %16 : vector<16x32xf32>
    %cst_8 = arith.constant 9.99999996E-13 : f32
    %18 = vector.broadcast %cst_8 : f32 to vector<16x1xf32>
    %19 = arith.addf %15, %18 : vector<16x1xf32>
    %20 = math.rsqrt %19 : vector<16x1xf32>
    %21 = vector.broadcast %20 : vector<16x1xf32> to vector<16x32xf32>
    %22 = arith.mulf %17, %21 : vector<16x32xf32>
    %23 = vector.broadcast %3 : vector<1x32xf32> to vector<16x32xf32>
    %24 = arith.mulf %22, %23 : vector<16x32xf32>
    %25 = vector.broadcast %4 : vector<1x32xf32> to vector<16x32xf32>
    %26 = arith.addf %24, %25 : vector<16x32xf32>
    %c0_9 = arith.constant 0 : index
    %c0_10 = arith.constant 0 : index
    %c0_11 = arith.constant 0 : index
    %27 = vector.load %arg5[%c0_9, %c0_10, %c0_11] : memref<2x32x192xbf16, #tpu.memory_space<vmem>>, vector<1x32x192xbf16>
    %28 = vector.shape_cast %27 : vector<1x32x192xbf16> to vector<32x192xbf16>
    %c0_12 = arith.constant 0 : index
    %c0_13 = arith.constant 0 : index
    %c0_14 = arith.constant 0 : index
    %29 = vector.load %arg4[%c0_12, %c0_13, %c0_14] : memref<2x8x128xf32, #tpu.memory_space<vmem>>, vector<1x8x128xf32>
    %30 = vector.shape_cast %29 : vector<1x8x128xf32> to vector<8x128xf32>
    %31 = vector.extract_strided_slice %28 {offsets = [0, 0], sizes = [32, 96], strides = [1, 1]} : vector<32x192xbf16> to vector<32x96xbf16>
    %32 = arith.truncf %26 : vector<16x32xf32> to vector<16x32xbf16>
    %cst_15 = arith.constant dense<0.000000e+00> : vector<16x96xf32>
    %33 = tpu.matmul %32, %31, %cst_15 {dimension_numbers = #tpu.dot_dimension_numbers<[1], [0], [0], [1], [0, 0, 1, 1], [], []>} : vector<16x32xbf16>, vector<32x96xbf16>, vector<16x96xf32> -> vector<16x96xf32>
    %34 = vector.extract_strided_slice %30 {offsets = [0, 0], sizes = [1, 96], strides = [1, 1]} : vector<8x128xf32> to vector<1x96xf32>
    %35 = vector.broadcast %34 : vector<1x96xf32> to vector<16x96xf32>
    %36 = arith.addf %33, %35 : vector<16x96xf32>
    %37 = vector.extract_strided_slice %36 {offsets = [0, 0], sizes = [16, 16], strides = [1, 1]} : vector<16x96xf32> to vector<16x16xf32>
    %38 = vector.extract_strided_slice %36 {offsets = [0, 32], sizes = [16, 16], strides = [1, 1]} : vector<16x96xf32> to vector<16x16xf32>
    %39 = vector.extract_strided_slice %36 {offsets = [0, 64], sizes = [16, 16], strides = [1, 1]} : vector<16x96xf32> to vector<16x16xf32>
    %40 = arith.truncf %37 : vector<16x16xf32> to vector<16x16xbf16>
    %41 = arith.truncf %38 : vector<16x16xf32> to vector<16x16xbf16>
    %cst_16 = arith.constant dense<0.000000e+00> : vector<16x16xf32>
    %42 = tpu.matmul %40, %41, %cst_16 {dimension_numbers = #tpu.dot_dimension_numbers<[1], [1], [0], [0], [0, 0, 1, 0], [], []>} : vector<16x16xbf16>, vector<16x16xbf16>, vector<16x16xf32> -> vector<16x16xf32>
    %cst_17 = arith.constant 2.500000e-01 : f32
    %43 = vector.broadcast %cst_17 : f32 to vector<16x16xf32>
    %44 = arith.mulf %42, %43 : vector<16x16xf32>
    %45 = arith.addf %44, %1 : vector<16x16xf32>
    %cst_18 = arith.constant dense<0xFF800000> : vector<16xf32>
    %46 = vector.multi_reduction <maximumf>, %45, %cst_18 [1] : vector<16x16xf32> to vector<16xf32>
    %47 = vector.shape_cast %46 : vector<16xf32> to vector<16x1xf32>
    %48 = vector.broadcast %47 : vector<16x1xf32> to vector<16x16xf32>
    %49 = arith.subf %45, %48 : vector<16x16xf32>
    %50 = math.exp %49 : vector<16x16xf32>
    %cst_19 = arith.constant dense<0.000000e+00> : vector<16xf32>
    %51 = vector.multi_reduction <add>, %50, %cst_19 [1] : vector<16x16xf32> to vector<16xf32>
    %52 = vector.shape_cast %51 : vector<16xf32> to vector<16x1xf32>
    %53 = tpu.reciprocal %52 {approx = true} : vector<16x1xf32> -> vector<16x1xf32>
    %54 = vector.broadcast %53 : vector<16x1xf32> to vector<16x16xf32>
    %55 = arith.mulf %50, %54 : vector<16x16xf32>
    %56 = arith.truncf %55 : vector<16x16xf32> to vector<16x16xbf16>
    %57 = arith.truncf %39 : vector<16x16xf32> to vector<16x16xbf16>
    %cst_20 = arith.constant dense<0.000000e+00> : vector<16x16xf32>
    %58 = tpu.matmul %56, %57, %cst_20 {dimension_numbers = #tpu.dot_dimension_numbers<[1], [0], [0], [1], [0, 0, 1, 1], [], []>} : vector<16x16xbf16>, vector<16x16xbf16>, vector<16x16xf32> -> vector<16x16xf32>
    %59 = vector.extract_strided_slice %36 {offsets = [0, 16], sizes = [16, 16], strides = [1, 1]} : vector<16x96xf32> to vector<16x16xf32>
    %60 = vector.extract_strided_slice %36 {offsets = [0, 48], sizes = [16, 16], strides = [1, 1]} : vector<16x96xf32> to vector<16x16xf32>
    %61 = vector.extract_strided_slice %36 {offsets = [0, 80], sizes = [16, 16], strides = [1, 1]} : vector<16x96xf32> to vector<16x16xf32>
    %62 = arith.truncf %59 : vector<16x16xf32> to vector<16x16xbf16>
    %63 = arith.truncf %60 : vector<16x16xf32> to vector<16x16xbf16>
    %cst_21 = arith.constant dense<0.000000e+00> : vector<16x16xf32>
    %64 = tpu.matmul %62, %63, %cst_21 {dimension_numbers = #tpu.dot_dimension_numbers<[1], [1], [0], [0], [0, 0, 1, 0], [], []>} : vector<16x16xbf16>, vector<16x16xbf16>, vector<16x16xf32> -> vector<16x16xf32>
    %cst_22 = arith.constant 2.500000e-01 : f32
    %65 = vector.broadcast %cst_22 : f32 to vector<16x16xf32>
    %66 = arith.mulf %64, %65 : vector<16x16xf32>
    %67 = arith.addf %66, %1 : vector<16x16xf32>
    %cst_23 = arith.constant dense<0xFF800000> : vector<16xf32>
    %68 = vector.multi_reduction <maximumf>, %67, %cst_23 [1] : vector<16x16xf32> to vector<16xf32>
    %69 = vector.shape_cast %68 : vector<16xf32> to vector<16x1xf32>
    %70 = vector.broadcast %69 : vector<16x1xf32> to vector<16x16xf32>
    %71 = arith.subf %67, %70 : vector<16x16xf32>
    %72 = math.exp %71 : vector<16x16xf32>
    %cst_24 = arith.constant dense<0.000000e+00> : vector<16xf32>
    %73 = vector.multi_reduction <add>, %72, %cst_24 [1] : vector<16x16xf32> to vector<16xf32>
    %74 = vector.shape_cast %73 : vector<16xf32> to vector<16x1xf32>
    %75 = tpu.reciprocal %74 {approx = true} : vector<16x1xf32> -> vector<16x1xf32>
    %76 = vector.broadcast %75 : vector<16x1xf32> to vector<16x16xf32>
    %77 = arith.mulf %72, %76 : vector<16x16xf32>
    %78 = arith.truncf %77 : vector<16x16xf32> to vector<16x16xbf16>
    %79 = arith.truncf %61 : vector<16x16xf32> to vector<16x16xbf16>
    %cst_25 = arith.constant dense<0.000000e+00> : vector<16x16xf32>
    %80 = tpu.matmul %78, %79, %cst_25 {dimension_numbers = #tpu.dot_dimension_numbers<[1], [0], [0], [1], [0, 0, 1, 1], [], []>} : vector<16x16xbf16>, vector<16x16xbf16>, vector<16x16xf32> -> vector<16x16xf32>
    %81 = tpu.concatenate %58, %80 in 1 : vector<16x16xf32>, vector<16x16xf32> -> vector<16x32xf32>
    %82 = vector.extract_strided_slice %28 {offsets = [0, 96], sizes = [32, 32], strides = [1, 1]} : vector<32x192xbf16> to vector<32x32xbf16>
    %83 = arith.truncf %81 : vector<16x32xf32> to vector<16x32xbf16>
    %cst_26 = arith.constant dense<0.000000e+00> : vector<16x32xf32>
    %84 = tpu.matmul %83, %82, %cst_26 {dimension_numbers = #tpu.dot_dimension_numbers<[1], [0], [0], [1], [0, 0, 1, 1], [], []>} : vector<16x32xbf16>, vector<32x32xbf16>, vector<16x32xf32> -> vector<16x32xf32>
    %85 = vector.extract_strided_slice %30 {offsets = [1, 0], sizes = [1, 32], strides = [1, 1]} : vector<8x128xf32> to vector<1x32xf32>
    %86 = vector.broadcast %85 : vector<1x32xf32> to vector<16x32xf32>
    %87 = arith.addf %84, %86 : vector<16x32xf32>
    %88 = arith.addf %87, %26 : vector<16x32xf32>
    %89 = vector.extract_strided_slice %30 {offsets = [2, 0], sizes = [1, 32], strides = [1, 1]} : vector<8x128xf32> to vector<1x32xf32>
    %90 = vector.extract_strided_slice %30 {offsets = [3, 0], sizes = [1, 32], strides = [1, 1]} : vector<8x128xf32> to vector<1x32xf32>
    %cst_27 = arith.constant dense<0.000000e+00> : vector<16xf32>
    %91 = vector.multi_reduction <add>, %88, %cst_27 [1] : vector<16x32xf32> to vector<16xf32>
    %92 = vector.shape_cast %91 : vector<16xf32> to vector<16x1xf32>
    %cst_28 = arith.constant 3.200000e+01 : f32
    %93 = vector.broadcast %cst_28 : f32 to vector<16x1xf32>
    %94 = arith.divf %92, %93 : vector<16x1xf32>
    %95 = vector.broadcast %94 : vector<16x1xf32> to vector<16x32xf32>
    %96 = arith.subf %88, %95 : vector<16x32xf32>
    %97 = arith.mulf %96, %96 : vector<16x32xf32>
    %cst_29 = arith.constant dense<0.000000e+00> : vector<16xf32>
    %98 = vector.multi_reduction <add>, %97, %cst_29 [1] : vector<16x32xf32> to vector<16xf32>
    %99 = vector.shape_cast %98 : vector<16xf32> to vector<16x1xf32>
    %cst_30 = arith.constant 3.200000e+01 : f32
    %100 = vector.broadcast %cst_30 : f32 to vector<16x1xf32>
    %101 = arith.divf %99, %100 : vector<16x1xf32>
    %102 = vector.broadcast %94 : vector<16x1xf32> to vector<16x32xf32>
    %103 = arith.subf %88, %102 : vector<16x32xf32>
    %cst_31 = arith.constant 9.99999996E-13 : f32
    %104 = vector.broadcast %cst_31 : f32 to vector<16x1xf32>
    %105 = arith.addf %101, %104 : vector<16x1xf32>
    %106 = math.rsqrt %105 : vector<16x1xf32>
    %107 = vector.broadcast %106 : vector<16x1xf32> to vector<16x32xf32>
    %108 = arith.mulf %103, %107 : vector<16x32xf32>
    %109 = vector.broadcast %89 : vector<1x32xf32> to vector<16x32xf32>
    %110 = arith.mulf %108, %109 : vector<16x32xf32>
    %111 = vector.broadcast %90 : vector<1x32xf32> to vector<16x32xf32>
    %112 = arith.addf %110, %111 : vector<16x32xf32>
    %113 = vector.extract_strided_slice %28 {offsets = [0, 128], sizes = [32, 64], strides = [1, 1]} : vector<32x192xbf16> to vector<32x64xbf16>
    %114 = arith.truncf %112 : vector<16x32xf32> to vector<16x32xbf16>
    %cst_32 = arith.constant dense<0.000000e+00> : vector<16x64xf32>
    %115 = tpu.matmul %114, %113, %cst_32 {dimension_numbers = #tpu.dot_dimension_numbers<[1], [0], [0], [1], [0, 0, 1, 1], [], []>} : vector<16x32xbf16>, vector<32x64xbf16>, vector<16x64xf32> -> vector<16x64xf32>
    %116 = vector.extract_strided_slice %30 {offsets = [4, 0], sizes = [1, 64], strides = [1, 1]} : vector<8x128xf32> to vector<1x64xf32>
    %117 = vector.broadcast %116 : vector<1x64xf32> to vector<16x64xf32>
    %118 = arith.addf %115, %117 : vector<16x64xf32>
    %cst_33 = arith.constant 5.000000e-01 : f32
    %119 = vector.broadcast %cst_33 : f32 to vector<16x64xf32>
    %120 = arith.mulf %119, %118 : vector<16x64xf32>
    %cst_34 = arith.constant 4.471500e-02 : f32
    %121 = vector.broadcast %cst_34 : f32 to vector<16x64xf32>
    %122 = arith.mulf %121, %118 : vector<16x64xf32>
    %123 = arith.mulf %122, %118 : vector<16x64xf32>
    %124 = arith.mulf %123, %118 : vector<16x64xf32>
    %125 = arith.addf %118, %124 : vector<16x64xf32>
    %cst_35 = arith.constant 0.797884583 : f32
    %126 = vector.broadcast %cst_35 : f32 to vector<16x64xf32>
    %127 = arith.mulf %126, %125 : vector<16x64xf32>
    %128 = math.tanh %127 : vector<16x64xf32>
    %cst_36 = arith.constant 1.000000e+00 : f32
    %129 = vector.broadcast %cst_36 : f32 to vector<16x64xf32>
    %130 = arith.addf %129, %128 : vector<16x64xf32>
    %131 = arith.mulf %120, %130 : vector<16x64xf32>
    %c0_37 = arith.constant 0 : index
    %c0_38 = arith.constant 0 : index
    %c0_39 = arith.constant 0 : index
    %132 = vector.load %arg6[%c0_37, %c0_38, %c0_39] : memref<2x64x32xbf16, #tpu.memory_space<vmem>>, vector<1x64x32xbf16>
    %133 = vector.shape_cast %132 : vector<1x64x32xbf16> to vector<64x32xbf16>
    %134 = arith.truncf %131 : vector<16x64xf32> to vector<16x64xbf16>
    %cst_40 = arith.constant dense<0.000000e+00> : vector<16x32xf32>
    %135 = tpu.matmul %134, %133, %cst_40 {dimension_numbers = #tpu.dot_dimension_numbers<[1], [0], [0], [1], [0, 0, 1, 1], [], []>} : vector<16x64xbf16>, vector<64x32xbf16>, vector<16x32xf32> -> vector<16x32xf32>
    %136 = vector.extract_strided_slice %30 {offsets = [5, 0], sizes = [1, 32], strides = [1, 1]} : vector<8x128xf32> to vector<1x32xf32>
    %137 = vector.broadcast %136 : vector<1x32xf32> to vector<16x32xf32>
    %138 = arith.addf %135, %137 : vector<16x32xf32>
    %139 = arith.addf %138, %112 : vector<16x32xf32>
    %140 = vector.extract_strided_slice %30 {offsets = [6, 0], sizes = [1, 32], strides = [1, 1]} : vector<8x128xf32> to vector<1x32xf32>
    %141 = vector.extract_strided_slice %30 {offsets = [7, 0], sizes = [1, 32], strides = [1, 1]} : vector<8x128xf32> to vector<1x32xf32>
    %cst_41 = arith.constant dense<0.000000e+00> : vector<16xf32>
    %142 = vector.multi_reduction <add>, %139, %cst_41 [1] : vector<16x32xf32> to vector<16xf32>
    %143 = vector.shape_cast %142 : vector<16xf32> to vector<16x1xf32>
    %cst_42 = arith.constant 3.200000e+01 : f32
    %144 = vector.broadcast %cst_42 : f32 to vector<16x1xf32>
    %145 = arith.divf %143, %144 : vector<16x1xf32>
    %146 = vector.broadcast %145 : vector<16x1xf32> to vector<16x32xf32>
    %147 = arith.subf %139, %146 : vector<16x32xf32>
    %148 = arith.mulf %147, %147 : vector<16x32xf32>
    %cst_43 = arith.constant dense<0.000000e+00> : vector<16xf32>
    %149 = vector.multi_reduction <add>, %148, %cst_43 [1] : vector<16x32xf32> to vector<16xf32>
    %150 = vector.shape_cast %149 : vector<16xf32> to vector<16x1xf32>
    %cst_44 = arith.constant 3.200000e+01 : f32
    %151 = vector.broadcast %cst_44 : f32 to vector<16x1xf32>
    %152 = arith.divf %150, %151 : vector<16x1xf32>
    %153 = vector.broadcast %145 : vector<16x1xf32> to vector<16x32xf32>
    %154 = arith.subf %139, %153 : vector<16x32xf32>
    %cst_45 = arith.constant 9.99999996E-13 : f32
    %155 = vector.broadcast %cst_45 : f32 to vector<16x1xf32>
    %156 = arith.addf %152, %155 : vector<16x1xf32>
    %157 = math.rsqrt %156 : vector<16x1xf32>
    %158 = vector.broadcast %157 : vector<16x1xf32> to vector<16x32xf32>
    %159 = arith.mulf %154, %158 : vector<16x32xf32>
    %160 = vector.broadcast %140 : vector<1x32xf32> to vector<16x32xf32>
    %161 = arith.mulf %159, %160 : vector<16x32xf32>
    %162 = vector.broadcast %141 : vector<1x32xf32> to vector<16x32xf32>
    %163 = arith.addf %161, %162 : vector<16x32xf32>
    %c1 = arith.constant 1 : index
    %c0_46 = arith.constant 0 : index
    %c0_47 = arith.constant 0 : index
    %164 = vector.load %arg5[%c1, %c0_46, %c0_47] : memref<2x32x192xbf16, #tpu.memory_space<vmem>>, vector<1x32x192xbf16>
    %165 = vector.shape_cast %164 : vector<1x32x192xbf16> to vector<32x192xbf16>
    %c1_48 = arith.constant 1 : index
    %c0_49 = arith.constant 0 : index
    %c0_50 = arith.constant 0 : index
    %166 = vector.load %arg4[%c1_48, %c0_49, %c0_50] : memref<2x8x128xf32, #tpu.memory_space<vmem>>, vector<1x8x128xf32>
    %167 = vector.shape_cast %166 : vector<1x8x128xf32> to vector<8x128xf32>
    %168 = vector.extract_strided_slice %165 {offsets = [0, 0], sizes = [32, 96], strides = [1, 1]} : vector<32x192xbf16> to vector<32x96xbf16>
    %169 = arith.truncf %163 : vector<16x32xf32> to vector<16x32xbf16>
    %cst_51 = arith.constant dense<0.000000e+00> : vector<16x96xf32>
    %170 = tpu.matmul %169, %168, %cst_51 {dimension_numbers = #tpu.dot_dimension_numbers<[1], [0], [0], [1], [0, 0, 1, 1], [], []>} : vector<16x32xbf16>, vector<32x96xbf16>, vector<16x96xf32> -> vector<16x96xf32>
    %171 = vector.extract_strided_slice %167 {offsets = [0, 0], sizes = [1, 96], strides = [1, 1]} : vector<8x128xf32> to vector<1x96xf32>
    %172 = vector.broadcast %171 : vector<1x96xf32> to vector<16x96xf32>
    %173 = arith.addf %170, %172 : vector<16x96xf32>
    %174 = vector.extract_strided_slice %173 {offsets = [0, 0], sizes = [16, 16], strides = [1, 1]} : vector<16x96xf32> to vector<16x16xf32>
    %175 = vector.extract_strided_slice %173 {offsets = [0, 32], sizes = [16, 16], strides = [1, 1]} : vector<16x96xf32> to vector<16x16xf32>
    %176 = vector.extract_strided_slice %173 {offsets = [0, 64], sizes = [16, 16], strides = [1, 1]} : vector<16x96xf32> to vector<16x16xf32>
    %177 = arith.truncf %174 : vector<16x16xf32> to vector<16x16xbf16>
    %178 = arith.truncf %175 : vector<16x16xf32> to vector<16x16xbf16>
    %cst_52 = arith.constant dense<0.000000e+00> : vector<16x16xf32>
    %179 = tpu.matmul %177, %178, %cst_52 {dimension_numbers = #tpu.dot_dimension_numbers<[1], [1], [0], [0], [0, 0, 1, 0], [], []>} : vector<16x16xbf16>, vector<16x16xbf16>, vector<16x16xf32> -> vector<16x16xf32>
    %cst_53 = arith.constant 2.500000e-01 : f32
    %180 = vector.broadcast %cst_53 : f32 to vector<16x16xf32>
    %181 = arith.mulf %179, %180 : vector<16x16xf32>
    %182 = arith.addf %181, %1 : vector<16x16xf32>
    %cst_54 = arith.constant dense<0xFF800000> : vector<16xf32>
    %183 = vector.multi_reduction <maximumf>, %182, %cst_54 [1] : vector<16x16xf32> to vector<16xf32>
    %184 = vector.shape_cast %183 : vector<16xf32> to vector<16x1xf32>
    %185 = vector.broadcast %184 : vector<16x1xf32> to vector<16x16xf32>
    %186 = arith.subf %182, %185 : vector<16x16xf32>
    %187 = math.exp %186 : vector<16x16xf32>
    %cst_55 = arith.constant dense<0.000000e+00> : vector<16xf32>
    %188 = vector.multi_reduction <add>, %187, %cst_55 [1] : vector<16x16xf32> to vector<16xf32>
    %189 = vector.shape_cast %188 : vector<16xf32> to vector<16x1xf32>
    %190 = tpu.reciprocal %189 {approx = true} : vector<16x1xf32> -> vector<16x1xf32>
    %191 = vector.broadcast %190 : vector<16x1xf32> to vector<16x16xf32>
    %192 = arith.mulf %187, %191 : vector<16x16xf32>
    %193 = arith.truncf %192 : vector<16x16xf32> to vector<16x16xbf16>
    %194 = arith.truncf %176 : vector<16x16xf32> to vector<16x16xbf16>
    %cst_56 = arith.constant dense<0.000000e+00> : vector<16x16xf32>
    %195 = tpu.matmul %193, %194, %cst_56 {dimension_numbers = #tpu.dot_dimension_numbers<[1], [0], [0], [1], [0, 0, 1, 1], [], []>} : vector<16x16xbf16>, vector<16x16xbf16>, vector<16x16xf32> -> vector<16x16xf32>
    %196 = vector.extract_strided_slice %173 {offsets = [0, 16], sizes = [16, 16], strides = [1, 1]} : vector<16x96xf32> to vector<16x16xf32>
    %197 = vector.extract_strided_slice %173 {offsets = [0, 48], sizes = [16, 16], strides = [1, 1]} : vector<16x96xf32> to vector<16x16xf32>
    %198 = vector.extract_strided_slice %173 {offsets = [0, 80], sizes = [16, 16], strides = [1, 1]} : vector<16x96xf32> to vector<16x16xf32>
    %199 = arith.truncf %196 : vector<16x16xf32> to vector<16x16xbf16>
    %200 = arith.truncf %197 : vector<16x16xf32> to vector<16x16xbf16>
    %cst_57 = arith.constant dense<0.000000e+00> : vector<16x16xf32>
    %201 = tpu.matmul %199, %200, %cst_57 {dimension_numbers = #tpu.dot_dimension_numbers<[1], [1], [0], [0], [0, 0, 1, 0], [], []>} : vector<16x16xbf16>, vector<16x16xbf16>, vector<16x16xf32> -> vector<16x16xf32>
    %cst_58 = arith.constant 2.500000e-01 : f32
    %202 = vector.broadcast %cst_58 : f32 to vector<16x16xf32>
    %203 = arith.mulf %201, %202 : vector<16x16xf32>
    %204 = arith.addf %203, %1 : vector<16x16xf32>
    %cst_59 = arith.constant dense<0xFF800000> : vector<16xf32>
    %205 = vector.multi_reduction <maximumf>, %204, %cst_59 [1] : vector<16x16xf32> to vector<16xf32>
    %206 = vector.shape_cast %205 : vector<16xf32> to vector<16x1xf32>
    %207 = vector.broadcast %206 : vector<16x1xf32> to vector<16x16xf32>
    %208 = arith.subf %204, %207 : vector<16x16xf32>
    %209 = math.exp %208 : vector<16x16xf32>
    %cst_60 = arith.constant dense<0.000000e+00> : vector<16xf32>
    %210 = vector.multi_reduction <add>, %209, %cst_60 [1] : vector<16x16xf32> to vector<16xf32>
    %211 = vector.shape_cast %210 : vector<16xf32> to vector<16x1xf32>
    %212 = tpu.reciprocal %211 {approx = true} : vector<16x1xf32> -> vector<16x1xf32>
    %213 = vector.broadcast %212 : vector<16x1xf32> to vector<16x16xf32>
    %214 = arith.mulf %209, %213 : vector<16x16xf32>
    %215 = arith.truncf %214 : vector<16x16xf32> to vector<16x16xbf16>
    %216 = arith.truncf %198 : vector<16x16xf32> to vector<16x16xbf16>
    %cst_61 = arith.constant dense<0.000000e+00> : vector<16x16xf32>
    %217 = tpu.matmul %215, %216, %cst_61 {dimension_numbers = #tpu.dot_dimension_numbers<[1], [0], [0], [1], [0, 0, 1, 1], [], []>} : vector<16x16xbf16>, vector<16x16xbf16>, vector<16x16xf32> -> vector<16x16xf32>
    %218 = tpu.concatenate %195, %217 in 1 : vector<16x16xf32>, vector<16x16xf32> -> vector<16x32xf32>
    %219 = vector.extract_strided_slice %165 {offsets = [0, 96], sizes = [32, 32], strides = [1, 1]} : vector<32x192xbf16> to vector<32x32xbf16>
    %220 = arith.truncf %218 : vector<16x32xf32> to vector<16x32xbf16>
    %cst_62 = arith.constant dense<0.000000e+00> : vector<16x32xf32>
    %221 = tpu.matmul %220, %219, %cst_62 {dimension_numbers = #tpu.dot_dimension_numbers<[1], [0], [0], [1], [0, 0, 1, 1], [], []>} : vector<16x32xbf16>, vector<32x32xbf16>, vector<16x32xf32> -> vector<16x32xf32>
    %222 = vector.extract_strided_slice %167 {offsets = [1, 0], sizes = [1, 32], strides = [1, 1]} : vector<8x128xf32> to vector<1x32xf32>
    %223 = vector.broadcast %222 : vector<1x32xf32> to vector<16x32xf32>
    %224 = arith.addf %221, %223 : vector<16x32xf32>
    %225 = arith.addf %224, %163 : vector<16x32xf32>
    %226 = vector.extract_strided_slice %167 {offsets = [2, 0], sizes = [1, 32], strides = [1, 1]} : vector<8x128xf32> to vector<1x32xf32>
    %227 = vector.extract_strided_slice %167 {offsets = [3, 0], sizes = [1, 32], strides = [1, 1]} : vector<8x128xf32> to vector<1x32xf32>
    %cst_63 = arith.constant dense<0.000000e+00> : vector<16xf32>
    %228 = vector.multi_reduction <add>, %225, %cst_63 [1] : vector<16x32xf32> to vector<16xf32>
    %229 = vector.shape_cast %228 : vector<16xf32> to vector<16x1xf32>
    %cst_64 = arith.constant 3.200000e+01 : f32
    %230 = vector.broadcast %cst_64 : f32 to vector<16x1xf32>
    %231 = arith.divf %229, %230 : vector<16x1xf32>
    %232 = vector.broadcast %231 : vector<16x1xf32> to vector<16x32xf32>
    %233 = arith.subf %225, %232 : vector<16x32xf32>
    %234 = arith.mulf %233, %233 : vector<16x32xf32>
    %cst_65 = arith.constant dense<0.000000e+00> : vector<16xf32>
    %235 = vector.multi_reduction <add>, %234, %cst_65 [1] : vector<16x32xf32> to vector<16xf32>
    %236 = vector.shape_cast %235 : vector<16xf32> to vector<16x1xf32>
    %cst_66 = arith.constant 3.200000e+01 : f32
    %237 = vector.broadcast %cst_66 : f32 to vector<16x1xf32>
    %238 = arith.divf %236, %237 : vector<16x1xf32>
    %239 = vector.broadcast %231 : vector<16x1xf32> to vector<16x32xf32>
    %240 = arith.subf %225, %239 : vector<16x32xf32>
    %cst_67 = arith.constant 9.99999996E-13 : f32
    %241 = vector.broadcast %cst_67 : f32 to vector<16x1xf32>
    %242 = arith.addf %238, %241 : vector<16x1xf32>
    %243 = math.rsqrt %242 : vector<16x1xf32>
    %244 = vector.broadcast %243 : vector<16x1xf32> to vector<16x32xf32>
    %245 = arith.mulf %240, %244 : vector<16x32xf32>
    %246 = vector.broadcast %226 : vector<1x32xf32> to vector<16x32xf32>
    %247 = arith.mulf %245, %246 : vector<16x32xf32>
    %248 = vector.broadcast %227 : vector<1x32xf32> to vector<16x32xf32>
    %249 = arith.addf %247, %248 : vector<16x32xf32>
    %250 = vector.extract_strided_slice %165 {offsets = [0, 128], sizes = [32, 64], strides = [1, 1]} : vector<32x192xbf16> to vector<32x64xbf16>
    %251 = arith.truncf %249 : vector<16x32xf32> to vector<16x32xbf16>
    %cst_68 = arith.constant dense<0.000000e+00> : vector<16x64xf32>
    %252 = tpu.matmul %251, %250, %cst_68 {dimension_numbers = #tpu.dot_dimension_numbers<[1], [0], [0], [1], [0, 0, 1, 1], [], []>} : vector<16x32xbf16>, vector<32x64xbf16>, vector<16x64xf32> -> vector<16x64xf32>
    %253 = vector.extract_strided_slice %167 {offsets = [4, 0], sizes = [1, 64], strides = [1, 1]} : vector<8x128xf32> to vector<1x64xf32>
    %254 = vector.broadcast %253 : vector<1x64xf32> to vector<16x64xf32>
    %255 = arith.addf %252, %254 : vector<16x64xf32>
    %cst_69 = arith.constant 5.000000e-01 : f32
    %256 = vector.broadcast %cst_69 : f32 to vector<16x64xf32>
    %257 = arith.mulf %256, %255 : vector<16x64xf32>
    %cst_70 = arith.constant 4.471500e-02 : f32
    %258 = vector.broadcast %cst_70 : f32 to vector<16x64xf32>
    %259 = arith.mulf %258, %255 : vector<16x64xf32>
    %260 = arith.mulf %259, %255 : vector<16x64xf32>
    %261 = arith.mulf %260, %255 : vector<16x64xf32>
    %262 = arith.addf %255, %261 : vector<16x64xf32>
    %cst_71 = arith.constant 0.797884583 : f32
    %263 = vector.broadcast %cst_71 : f32 to vector<16x64xf32>
    %264 = arith.mulf %263, %262 : vector<16x64xf32>
    %265 = math.tanh %264 : vector<16x64xf32>
    %cst_72 = arith.constant 1.000000e+00 : f32
    %266 = vector.broadcast %cst_72 : f32 to vector<16x64xf32>
    %267 = arith.addf %266, %265 : vector<16x64xf32>
    %268 = arith.mulf %257, %267 : vector<16x64xf32>
    %c1_73 = arith.constant 1 : index
    %c0_74 = arith.constant 0 : index
    %c0_75 = arith.constant 0 : index
    %269 = vector.load %arg6[%c1_73, %c0_74, %c0_75] : memref<2x64x32xbf16, #tpu.memory_space<vmem>>, vector<1x64x32xbf16>
    %270 = vector.shape_cast %269 : vector<1x64x32xbf16> to vector<64x32xbf16>
    %271 = arith.truncf %268 : vector<16x64xf32> to vector<16x64xbf16>
    %cst_76 = arith.constant dense<0.000000e+00> : vector<16x32xf32>
    %272 = tpu.matmul %271, %270, %cst_76 {dimension_numbers = #tpu.dot_dimension_numbers<[1], [0], [0], [1], [0, 0, 1, 1], [], []>} : vector<16x64xbf16>, vector<64x32xbf16>, vector<16x32xf32> -> vector<16x32xf32>
    %273 = vector.extract_strided_slice %167 {offsets = [5, 0], sizes = [1, 32], strides = [1, 1]} : vector<8x128xf32> to vector<1x32xf32>
    %274 = vector.broadcast %273 : vector<1x32xf32> to vector<16x32xf32>
    %275 = arith.addf %272, %274 : vector<16x32xf32>
    %276 = arith.addf %275, %249 : vector<16x32xf32>
    %277 = vector.extract_strided_slice %167 {offsets = [6, 0], sizes = [1, 32], strides = [1, 1]} : vector<8x128xf32> to vector<1x32xf32>
    %278 = vector.extract_strided_slice %167 {offsets = [7, 0], sizes = [1, 32], strides = [1, 1]} : vector<8x128xf32> to vector<1x32xf32>
    %cst_77 = arith.constant dense<0.000000e+00> : vector<16xf32>
    %279 = vector.multi_reduction <add>, %276, %cst_77 [1] : vector<16x32xf32> to vector<16xf32>
    %280 = vector.shape_cast %279 : vector<16xf32> to vector<16x1xf32>
    %cst_78 = arith.constant 3.200000e+01 : f32
    %281 = vector.broadcast %cst_78 : f32 to vector<16x1xf32>
    %282 = arith.divf %280, %281 : vector<16x1xf32>
    %283 = vector.broadcast %282 : vector<16x1xf32> to vector<16x32xf32>
    %284 = arith.subf %276, %283 : vector<16x32xf32>
    %285 = arith.mulf %284, %284 : vector<16x32xf32>
    %cst_79 = arith.constant dense<0.000000e+00> : vector<16xf32>
    %286 = vector.multi_reduction <add>, %285, %cst_79 [1] : vector<16x32xf32> to vector<16xf32>
    %287 = vector.shape_cast %286 : vector<16xf32> to vector<16x1xf32>
    %cst_80 = arith.constant 3.200000e+01 : f32
    %288 = vector.broadcast %cst_80 : f32 to vector<16x1xf32>
    %289 = arith.divf %287, %288 : vector<16x1xf32>
    %290 = vector.broadcast %282 : vector<16x1xf32> to vector<16x32xf32>
    %291 = arith.subf %276, %290 : vector<16x32xf32>
    %cst_81 = arith.constant 9.99999996E-13 : f32
    %292 = vector.broadcast %cst_81 : f32 to vector<16x1xf32>
    %293 = arith.addf %289, %292 : vector<16x1xf32>
    %294 = math.rsqrt %293 : vector<16x1xf32>
    %295 = vector.broadcast %294 : vector<16x1xf32> to vector<16x32xf32>
    %296 = arith.mulf %291, %295 : vector<16x32xf32>
    %297 = vector.broadcast %277 : vector<1x32xf32> to vector<16x32xf32>
    %298 = arith.mulf %296, %297 : vector<16x32xf32>
    %299 = vector.broadcast %278 : vector<1x32xf32> to vector<16x32xf32>
    %300 = arith.addf %298, %299 : vector<16x32xf32>
    %301 = vector.extract_strided_slice %300 {offsets = [0, 0], sizes = [1, 32], strides = [1, 1]} : vector<16x32xf32> to vector<1x32xf32>
    %302 = vector.extract_strided_slice %300 {offsets = [8, 0], sizes = [1, 32], strides = [1, 1]} : vector<16x32xf32> to vector<1x32xf32>
    %303 = tpu.concatenate %301, %302 in 0 : vector<1x32xf32>, vector<1x32xf32> -> vector<2x32xf32>
    %c0_82 = arith.constant 0 : index
    %c0_83 = arith.constant 0 : index
    %304 = vector.load %arg7[%c0_82, %c0_83] : memref<32x160xbf16, #tpu.memory_space<vmem>>, vector<32x160xbf16>
    %305 = vector.extract_strided_slice %304 {offsets = [0, 0], sizes = [32, 32], strides = [1, 1]} : vector<32x160xbf16> to vector<32x32xbf16>
    %306 = arith.truncf %303 : vector<2x32xf32> to vector<2x32xbf16>
    %cst_84 = arith.constant dense<0.000000e+00> : vector<2x32xf32>
    %307 = tpu.matmul %306, %305, %cst_84 {dimension_numbers = #tpu.dot_dimension_numbers<[1], [0], [0], [1], [0, 0, 1, 1], [], []>} : vector<2x32xbf16>, vector<32x32xbf16>, vector<2x32xf32> -> vector<2x32xf32>
    %308 = vector.extract_strided_slice %0 {offsets = [2, 0], sizes = [1, 32], strides = [1, 1]} : vector<4x128xf32> to vector<1x32xf32>
    %309 = vector.broadcast %308 : vector<1x32xf32> to vector<2x32xf32>
    %310 = arith.addf %307, %309 : vector<2x32xf32>
    %311 = math.tanh %310 : vector<2x32xf32>
    %312 = vector.extract_strided_slice %304 {offsets = [0, 32], sizes = [32, 128], strides = [1, 1]} : vector<32x160xbf16> to vector<32x128xbf16>
    %313 = arith.truncf %311 : vector<2x32xf32> to vector<2x32xbf16>
    %cst_85 = arith.constant dense<0.000000e+00> : vector<2x128xf32>
    %314 = tpu.matmul %313, %312, %cst_85 {dimension_numbers = #tpu.dot_dimension_numbers<[1], [0], [0], [1], [0, 0, 1, 1], [], []>} : vector<2x32xbf16>, vector<32x128xbf16>, vector<2x128xf32> -> vector<2x128xf32>
    %315 = vector.extract_strided_slice %0 {offsets = [3, 0], sizes = [1, 128], strides = [1, 1]} : vector<4x128xf32> to vector<1x128xf32>
    %316 = vector.broadcast %315 : vector<1x128xf32> to vector<2x128xf32>
    %317 = arith.addf %314, %316 : vector<2x128xf32>
    %c0_86 = arith.constant 0 : index
    %c0_87 = arith.constant 0 : index
    %318 = vector.load %arg8[%c0_86, %c0_87] : memref<2x128xf32, #tpu.memory_space<vmem>>, vector<2x128xf32>
    tpu.vector_store %arg8[%c0_86, %c0_87], %317 {strides = array<i32>} : memref<2x128xf32, #tpu.memory_space<vmem>>, vector<2x128xf32>,
    return
  }
  func.func @transform_0(%arg0: i32) -> (i32, i32) {
    %c0_i32 = arith.constant 0 : i32
    %c0_i32_0 = arith.constant 0 : i32
    %c0_i32_1 = arith.constant 0 : i32
    return %c0_i32, %c0_i32_0 : i32, i32
  }
  func.func @transform_1(%arg0: i32) -> (i32, i32) {
    %c0_i32 = arith.constant 0 : i32
    %c0_i32_0 = arith.constant 0 : i32
    %c0_i32_1 = arith.constant 0 : i32
    return %c0_i32, %c0_i32_0 : i32, i32
  }
  func.func @transform_2(%arg0: i32) -> (i32, i32) {
    %c0_i32 = arith.constant 0 : i32
    %c0_i32_0 = arith.constant 0 : i32
    %c0_i32_1 = arith.constant 0 : i32
    return %c0_i32, %c0_i32_0 : i32, i32
  }
  func.func @transform_3(%arg0: i32) -> (i32, i32, i32) {
    %c0_i32 = arith.constant 0 : i32
    %c0_i32_0 = arith.constant 0 : i32
    %c0_i32_1 = arith.constant 0 : i32
    %c0_i32_2 = arith.constant 0 : i32
    return %c0_i32, %c0_i32_0, %c0_i32_1 : i32, i32, i32
  }
  func.func @transform_4(%arg0: i32) -> (i32, i32, i32) {
    %c0_i32 = arith.constant 0 : i32
    %c0_i32_0 = arith.constant 0 : i32
    %c0_i32_1 = arith.constant 0 : i32
    %c0_i32_2 = arith.constant 0 : i32
    return %c0_i32, %c0_i32_0, %c0_i32_1 : i32, i32, i32
  }
  func.func @transform_5(%arg0: i32) -> (i32, i32, i32) {
    %c0_i32 = arith.constant 0 : i32
    %c0_i32_0 = arith.constant 0 : i32
    %c0_i32_1 = arith.constant 0 : i32
    %c0_i32_2 = arith.constant 0 : i32
    return %c0_i32, %c0_i32_0, %c0_i32_1 : i32, i32, i32
  }
  func.func @transform_6(%arg0: i32) -> (i32, i32) {
    %c0_i32 = arith.constant 0 : i32
    %c0_i32_0 = arith.constant 0 : i32
    %c0_i32_1 = arith.constant 0 : i32
    return %c0_i32, %c0_i32_0 : i32, i32
  }
  func.func @transform_7(%arg0: i32) -> (i32, i32) {
    %c0_i32 = arith.constant 0 : i32
    %c0_i32_0 = arith.constant 0 : i32
    %c0_i32_1 = arith.constant 0 : i32
    return %c0_i32, %c0_i32_0 : i32, i32
  }
}

</mosaic_0001>

<bundles_post_ra>
// kernel: sentiment_classifier_forward.1
= control target key start
LH: loop header
LB: loop body
LE: loop exit
PB: predicated region body
PF: predicated region fallthrough
CT: control target
= control target key end

     0   :  { %vm33_vm0 = vcmask 261120   ;;  %s2245_s0 = inlined_call_operand.vmem [shape: f32[16,32], index: 0, kind: input, shape index: {}]   ;;  %s2246_s1 = inlined_call_operand.vmem [shape: f32[16,16], index: 1, kind: input, shape index: {}]   ;;  %s2247_s2 = inlined_call_operand.vmem [shape: f32[4,128], index: 2, kind: input, shape index: {}]   ;;  %s2248_s3 = inlined_call_operand.vmem [shape: f32[2,8,128], index: 3, kind: input, shape index: {}]   ;;  %s2249_s4 = inlined_call_operand.vmem [shape: bf16[2,32,192], index: 4, kind: input, shape index: {}]   ;;  %s2250_s5 = inlined_call_operand.vmem [shape: bf16[2,64,32], index: 5, kind: input, shape index: {}]   ;;  %s2251_s6 = inlined_call_operand.vmem [shape: bf16[32,160], index: 6, kind: input, shape index: {}]   ;;  %s2252_s7 = inlined_call_operand.hbm [shape: f32[2,128], index: 7, kind: output, shape index: {}]  }
   0x1   :  { %v31_v0 = vld [vmem:[%s2245_s0] sm:$0xff]  ;;  %v32_v1 = vld [vmem:[%s2245_s0 + $0x8] sm:$0xff] }
   0x2   :  { %v34_v2 = vsel %vm33_vm0, %v31_v0, 0.0  ;;  %v37_v3 = vsel %vm33_vm0, %v32_v1, 0.0 }
   0x3   :  { %35 = vadd.xlane.f32.xlu0 %v34_v2 }
   0x7   :  { %38 = vadd.xlane.f32.xlu0 %v37_v3 }
   0x8   :  { %12 = vsyncpa [#allocation3], 0  ;;  %v1895_v14 = vld [vmem:[%s2249_s4 + $0x10] ss:$8 sps:$4 sm:$0xff]   ;;  %v1832_v15 = vmov 0.0   ;;  %vm1833_vm1 = vmmov 0   ;;  %v61_v23 = vlaneseq }
   0x9   :  { %1565 = vmatprep.subr.bf16.mxu0 %v1832_v15  ;;  %1569 = vmatprep.mubr.msk.bf16.mxu0 %vm1833_vm1, %v1832_v15  ;;  %v1904_v16 = vld [vmem:[%s2249_s4] ss:$8 sps:$4 sm:$0xff]   ;;  %s1834_s12 = smov 80   ;;  %s1835_s13 = smov 96   ;;  %vm143_vm2 = vcmask 130048   ;;  %vm607_vm3 = vcmask 523264  }
   0xa   :  { %1566 = vmatpush3.bf16.msra.mxu0 %v1895_v14  ;;  %1573 = vmatprep.subr.bf16.mxu1 %v1832_v15  ;;  %v1912_v24 = vshrl.u32 %v61_v23, 7  ;;  %v28_v26 = vld [vmem:[%s2247_s2] sm:$0xf]  ;;  %s1836_s14 = smov 112   ;;  %v1969_v59 = vld [vmem:[%s2246_s1 + $0x8] sm:$0xff]  ;;  %s1838_s19 = smov 48  }
   0xb   :  { %1567 = vmatprep.subr.bf16.mxu0 %v1832_v15  ;;  %1575 = vmatprep.mubr.msk.bf16.mxu1 %vm1833_vm1, %v1832_v15  ;;  %v1937_v39 = vld [vmem:[%s2248_s3] sm:$0xff]  ;;  %s1839_s24 = smov 32   ;;  %s1840_s25 = smov 16   ;;  %vm1315_vm4 = vcmask 1040384   ;;  %vm1401_vm5 = vcmask 785408  }
   0xc   :  { %v1915_v25 = vsub.s32 0, %v1912_v24  ;;  %v1922_v30 = vsub.s32 1, %v1912_v24  ;;  %v1963_v54 = vld [vmem:[%s2246_s1] sm:$0xff]  ;;  %s1837_s1 = smov 64   ;;  %s1841_s9 = smov [#allocation2]  }
   0xd   :  { %s1456_s10 = sshll.u32 %s1841_s9, 4  ;;  %s1457_s10 = int_to_ptr.vmem [resolvable:$true] %s1456_s10 }
   0xe   :  { %1568 = vmatpush3.bf16.msra.mxu0 %v1904_v16  ;;  %v64_v29 = vrot.slane %v28_v26, %v1915_v25  ;;  %v70_v34 = vrot.slane %v28_v26, %v1922_v30  ;;  %v82_v41 = vrot.slane %v1937_v39, %v1915_v25  ;;  %p1815_p1 = scmp.lt.s32.totalorder %s1457_s10, %s1457_s10 }
   0xf   :  { %1579 = vmatprep.subr.bf16.mxu0 %v1832_v15 }
  0x8c   :  { %v36_v4 = vpop.xlane.xlu0 %35 }
  0x8d   :  { %v41_v5 = vmul.f32 0.03125, %v36_v4 }
  0x8f   :  { %v43_v6 = vsub.f32 %v31_v0, %v41_v5 }
  0x90   :  { %v39_v7 = vpop.xlane.xlu0 %38 }
  0x91   :  { %v42_v8 = vmul.f32 0.03125, %v39_v7  ;;  %v45_v9 = vmul.f32 %v43_v6, %v43_v6 }
  0x93   :  { %v44_v10 = vsub.f32 %v32_v1, %v42_v8  ;;  %v47_v11 = vsel %vm33_vm0, %v45_v9, 0.0 }
  0x94   :  { %48 = vadd.xlane.f32.xlu1 %v47_v11 }
  0x95   :  { %v46_v12 = vmul.f32 %v44_v10, %v44_v10 }
  0x97   :  { %v50_v13 = vsel %vm33_vm0, %v46_v12, 0.0 }
  0x98   :  { %51 = vadd.xlane.f32.xlu1 %v50_v13 }
 0x11d   :  { %v49_v17 = vpop.xlane.xlu1 %48 }
 0x11e   :  { %v53_v18 = vmul.f32 0.03125, %v49_v17 }
 0x120   :  { %v55_v19 = vadd.f32 1e-12, %v53_v18 }
 0x121   :  { %v52_v20 = vpop.xlane.xlu1 %51 }
 0x122   :  { %1747 = vrsqrt.f32 %v55_v19  ;;  %v54_v21 = vmul.f32 0.03125, %v52_v20 }
 0x124   :  { %v56_v22 = vadd.f32 1e-12, %v54_v21 }
 0x126   :  { %1749 = vrsqrt.f32 %v56_v22 }
 0x12f   :  { %v1748_v27 = vpop.eup %1747 }
 0x130   :  { %v59_v28 = vmul.f32 %v1748_v27, %v43_v6 }
 0x132   :  { %v65_v33 = vmul.f32 %v64_v29, %v59_v28 }
 0x133   :  { %v1750_v31 = vpop.eup %1749 }
 0x134   :  { %v60_v32 = vmul.f32 %v1750_v31, %v44_v10  ;;  %v1925_v36 = vadd.f32 %v70_v34, %v65_v33 }
 0x136   :  { %v66_v35 = vmul.f32 %v64_v29, %v60_v32 }
 0x138   :  { %v1927_v37 = vadd.f32 %v70_v34, %v66_v35 }
 0x13a   :  { %v78_v38 = vpack.c.bf16 %v1927_v37, %v1925_v36 }
 0x13c   :  { %1570 = vmatmul.mubr.msk.bf16.vlgmr.msra.gmra.mxu0 %vm33_vm0, %v78_v38 }
 0x13d   :  { %1581 = vmatprep.mubr.msk.bf16.mxu0 %vm1833_vm1, %v1832_v15 }
 0x1fc   :  { %v132_v40 = vpop.f32.mrf.mxu0 }
 0x1fd   :  { %v133_v44 = vadd.f32 %v132_v40, %v82_v41 }
 0x1fe   :  { %v1571_v42 = vpop.f32.mrf.mxu0 }
 0x200   :  { %v135_v43 = vpop.f32.mrf.mxu0 }
 0x201   :  { %v136_v45 = vadd.f32 %v135_v43, %v82_v41 }
 0x202   :  { %v1572_v46 = vpop.f32.mrf.mxu0 }
 0x203   :  { %v1941_v47 = vpack.c.bf16 %v136_v45, %v133_v44 }
 0x205   :  { %267 = vrot.lane.b32.xlu1 %v1941_v47, %s1834_s12  ;;  %141 = vrot.lane.b32.xlu0 %v1941_v47, %s1835_s13 }
 0x209   :  { %265 = vrot.lane.b32.xlu1 %v1941_v47, %s1836_s14 }
 0x277   :  { %v142_v48 = vpop.permute.xlu0 %141  ;;  %v268_v50 = vpop.permute.xlu1 %267 }
 0x278   :  { %v148_v49 = vsel %vm143_vm2, %v142_v48, 0  ;;  %v273_v51 = vsel %vm143_vm2, %v268_v50, 0 }
 0x279   :  { %1574 = vmatpush3.bf16.xpose.msra.mxu1 %v148_v49 }
 0x27a   :  { %1585 = vmatprep.subr.bf16.mxu1 %v1832_v15 }
 0x27b   :  { %v266_v52 = vpop.permute.xlu1 %265 }
 0x280   :  { %1576 = vmatmul.mubr.msk.bf16.vlgmr.msra.gmra.mxu1 %vm143_vm2, %v1941_v47 }
 0x281   :  { %1586 = vmatpush3.bf16.xpose.msra.mxu1 %v273_v51  ;;  %1587 = vmatprep.mubr.msk.bf16.mxu1 %vm1833_vm1, %v1832_v15 }
 0x282   :  { %1597 = vmatprep.subr.bf16.mxu1 %v1832_v15 }
 0x288   :  { %1588 = vmatmul.mubr.msk.bf16.vlgmr.msra.gmra.mxu1 %vm143_vm2, %v266_v52 }
 0x289   :  { %1601 = vmatprep.mubr.msk.bf16.mxu1 %vm1833_vm1, %v1832_v15 }
 0x340   :  { %v184_v53 = vpop.f32.mrf.mxu1 }
 0x341   :  { %v191_v55 = vmul.f32 0.25, %v184_v53 }
 0x342   :  { %v1577_v56 = vpop.f32.mrf.mxu1 }
 0x343   :  { %v193_v57 = vadd.f32 %v191_v55, %v1963_v54  ;;  %v1723_v56 = vld [vmem:[%s2249_s4 + $0x14] ss:$8 sps:$4 sm:$0xff]  }
 0x344   :  { %v187_v58 = vpop.f32.mrf.mxu1 }
 0x345   :  { %v192_v60 = vmul.f32 0.25, %v187_v58  ;;  %v195_v61 = vsel %vm143_vm2, %v193_v57, -inf  ;;  %v1726_v58 = vld [vmem:[%s2249_s4 + $0x4] ss:$8 sps:$4 sm:$0xff]  }
 0x346   :  { %196 = vmax.xlane.f32.xlu1 %v195_v61  ;;  %v1578_v62 = vpop.f32.mrf.mxu1 }
 0x347   :  { %v194_v63 = vadd.f32 %v192_v60, %v1969_v59 }
 0x348   :  { %v309_v0 = vpop.f32.mrf.mxu1 }
 0x349   :  { %v316_v1 = vmul.f32 0.25, %v309_v0  ;;  %v198_v2 = vsel %vm143_vm2, %v194_v63, -inf }
 0x34a   :  { %199 = vmax.xlane.f32.xlu0 %v198_v2  ;;  %v1589_v3 = vpop.f32.mrf.mxu1 }
 0x34b   :  { %v318_v4 = vadd.f32 %v316_v1, %v1963_v54 }
 0x34c   :  { %v312_v5 = vpop.f32.mrf.mxu1 }
 0x34d   :  { %v317_v6 = vmul.f32 0.25, %v312_v5  ;;  %v320_v7 = vsel %vm143_vm2, %v318_v4, -inf }
 0x34e   :  { %321 = vmax.xlane.f32.xlu0 %v320_v7  ;;  %v1590_v8 = vpop.f32.mrf.mxu1 }
 0x34f   :  { %v319_v9 = vadd.f32 %v317_v6, %v1969_v59 }
 0x351   :  { %v323_v10 = vsel %vm143_vm2, %v319_v9, -inf }
 0x352   :  { %324 = vmax.xlane.f32.xlu0 %v323_v10 }
 0x3cf   :  { %v197_v11 = vpop.xlane.xlu1 %196 }
 0x3d0   :  { %v201_v12 = vsub.f32 %v193_v57, %v197_v11 }
 0x3d2   :  { %v203_v13 = vmul.f32 1.442695, %v201_v12 }
 0x3d3   :  { %v200_v17 = vpop.xlane.xlu0 %199 }
 0x3d4   :  { %1751 = vpow2.f32 %v203_v13  ;;  %v202_v18 = vsub.f32 %v194_v63, %v200_v17 }
 0x3d6   :  { %v205_v19 = vmul.f32 1.442695, %v202_v18 }
 0x3d7   :  { %v322_v20 = vpop.xlane.xlu0 %321 }
 0x3d8   :  { %1753 = vpow2.f32 %v205_v19  ;;  %v326_v21 = vsub.f32 %v318_v4, %v322_v20 }
 0x3da   :  { %v328_v22 = vmul.f32 1.442695, %v326_v21 }
 0x3db   :  { %v325_v23 = vpop.xlane.xlu0 %324 }
 0x3dc   :  { %1755 = vpow2.f32 %v328_v22  ;;  %v327_v26 = vsub.f32 %v319_v9, %v325_v23 }
 0x3de   :  { %v330_v27 = vmul.f32 1.442695, %v327_v26 }
 0x3e0   :  { %1757 = vpow2.f32 %v330_v27 }
 0x3e1   :  { %v1752_v28 = vpop.eup %1751 }
 0x3e2   :  { %v207_v29 = vsel %vm143_vm2, %v1752_v28, 0.0 }
 0x3e3   :  { %208 = vadd.xlane.f32.xlu1 %v207_v29 }
 0x3e5   :  { %v1754_v31 = vpop.eup %1753 }
 0x3e6   :  { %v210_v32 = vsel %vm143_vm2, %v1754_v31, 0.0 }
 0x3e7   :  { %211 = vadd.xlane.f32.xlu0 %v210_v32 }
 0x3e9   :  { %v1756_v33 = vpop.eup %1755 }
 0x3ea   :  { %v332_v34 = vsel %vm143_vm2, %v1756_v33, 0.0 }
 0x3eb   :  { %333 = vadd.xlane.f32.xlu1 %v332_v34 }
 0x3ed   :  { %v1758_v35 = vpop.eup %1757 }
 0x3ee   :  { %v335_v38 = vsel %vm143_vm2, %v1758_v35, 0.0 }
 0x3ef   :  { %336 = vadd.xlane.f32.xlu0 %v335_v38 }
 0x3fc   :  { %218 = vrot.lane.b32.xlu1 %v1941_v47, %s1837_s1 }
 0x400   :  { %407 = vrot.lane.b32.xlu1 %v1895_v14, %s1839_s24 }
 0x405   :  { %343 = vrot.lane.b32.xlu0 %v1941_v47, %s1838_s19 }
 0x46c   :  { %v209_v40 = vpop.xlane.xlu1 %208 }
 0x46d   :  { %1759 = vrcp.f32 %v209_v40 }
 0x470   :  { %v212_v41 = vpop.xlane.xlu0 %211 }
 0x471   :  { %1761 = vrcp.f32 %v212_v41 }
 0x474   :  { %v334_v42 = vpop.xlane.xlu1 %333 }
 0x475   :  { %1763 = vrcp.f32 %v334_v42 }
 0x478   :  { %v219_v43 = vpop.permute.xlu1 %218  ;;  %v337_v44 = vpop.xlane.xlu0 %336 }
 0x479   :  { %1765 = vrcp.f32 %v337_v44  ;;  %1580 = vmatpush3.bf16.msra.mxu0 %v219_v43 }
 0x47a   :  { %1591 = vmatprep.subr.bf16.mxu0 %v1832_v15  ;;  %v1760_v45 = vpop.eup %1759 }
 0x47b   :  { %v215_v48 = vmul.f32 %v1760_v45, %v1752_v28  ;;  %v2023_v45 = vsub.s32 2, %v1912_v24 }
 0x47c   :  { %v344_v51 = vpop.permute.xlu0 %343  ;;  %v408_v60 = vpop.permute.xlu1 %407 }
 0x47d   :  { %1598 = vmatpush3.bf16.msra.mxu1 %v408_v60  ;;  %v1727_v60 = vld [vmem:[%s2250_s5 + $0x18] sm:$0xff]  }
 0x47e   :  { %v1762_v46 = vpop.eup %1761  ;;  %1599 = vmatprep.subr.bf16.mxu1 %v1832_v15 }
 0x47f   :  { %v216_v49 = vmul.f32 %v1762_v46, %v1754_v31 }
 0x481   :  { %v217_v50 = vpack.c.bf16 %v216_v49, %v215_v48  ;;  %v486_v49 = vrot.slane %v1937_v39, %v2023_v45 }
 0x482   :  { %v1764_v47 = vpop.eup %1763 }
 0x483   :  { %1582 = vmatmul.mubr.msk.bf16.vlgmr.msra.gmra.mxu0 %vm143_vm2, %v217_v50  ;;  %v340_v53 = vmul.f32 %v1764_v47, %v1756_v33  ;;  %v2028_v50 = vsub.s32 3, %v1912_v24 }
 0x484   :  { %1592 = vmatpush3.bf16.msra.mxu0 %v344_v51  ;;  %1593 = vmatprep.mubr.msk.bf16.mxu0 %vm1833_vm1, %v1832_v15 }
 0x485   :  { %1605 = vmatprep.subr.bf16.mxu0 %v1832_v15 }
 0x486   :  { %v1766_v52 = vpop.eup %1765 }
 0x487   :  { %v341_v55 = vmul.f32 %v1766_v52, %v1758_v35 }
 0x489   :  { %v342_v57 = vpack.c.bf16 %v341_v55, %v340_v53  ;;  %v492_v53 = vrot.slane %v1937_v39, %v2028_v50 }
 0x48b   :  { %1594 = vmatmul.mubr.msk.bf16.vlgmr.msra.gmra.mxu0 %vm143_vm2, %v342_v57 }
 0x48c   :  { %1606 = vmatpush3.bf16.msra.mxu0 %v1723_v56  ;;  %1609 = vmatprep.mubr.msk.bf16.mxu0 %vm1833_vm1, %v1832_v15 }
 0x48d   :  { %1607 = vmatprep.subr.bf16.mxu0 %v1832_v15 }
 0x490   :  { %1608 = vmatpush3.bf16.msra.mxu0 %v1726_v58 }
 0x491   :  { %1625 = vmatprep.subr.bf16.mxu0 %v1832_v15 }
 0x543   :  { %v258_v61 = vpop.f32.mrf.mxu0 }
 0x545   :  { %v1583_v62 = vpop.f32.mrf.mxu0 }
 0x546   :  { %v1729_v62 = vld [vmem:[%s2250_s5 + $0x8] sm:$0xff]  }
 0x547   :  { %v261_v63 = vpop.f32.mrf.mxu0 }
 0x549   :  { %v1584_v0 = vpop.f32.mrf.mxu0 }
 0x54a   :  { %v498_v0 = vsub.s32 4, %v1912_v24 }
 0x54b   :  { %v383_v1 = vpop.f32.mrf.mxu0 }
 0x54d   :  { %v1595_v2 = vpop.f32.mrf.mxu0 }
 0x54f   :  { %v386_v3 = vpop.f32.mrf.mxu0 }
 0x550   :  { %v1711_v4 = vpack.i.bf16 %v386_v3, %v383_v1  ;;  %v499_v1 = vrot.slane %v1937_v39, %v498_v0 }
 0x551   :  { %v1596_v5 = vpop.f32.mrf.mxu0 }
 0x552   :  { %1712 = vrot.lane.b32.xlu1 %v1711_v4, %s1840_s25 }
 0x556   :  { %405 = vrot.lane.b32.xlu1 %v1904_v16, %s1839_s24  ;;  %v404_v16 = vrot.slane %v1937_v39, %v1922_v30 }
 0x5c4   :  { %v1713_v14 = vpop.permute.xlu1 %1712 }
 0x5c5   :  { %v1715_v6 = vunpack.i.h.bf16 %v1713_v14  ;;  %v1714_v7 = vunpack.i.l.bf16 %v1713_v14 }
 0x5c7   :  { %v399_v8 = vsel %vm143_vm2, %v261_v63, %v1715_v6  ;;  %v398_v9 = vsel %vm143_vm2, %v258_v61, %v1714_v7  ;;  %v1728_v61 = vld [vmem:[%s2250_s5 + $0x10] sm:$0xff]   ;;  %v1730_v63 = vld [vmem:[%s2250_s5] sm:$0xff]  }
 0x5c8   :  { %v406_v10 = vpop.permute.xlu1 %405  ;;  %v400_v11 = vpack.c.bf16 %v399_v8, %v398_v9 }
 0x5c9   :  { %1600 = vmatpush3.bf16.msra.mxu1 %v406_v10 }
 0x5ca   :  { %1613 = vmatprep.subr.bf16.mxu1 %v1832_v15 }
 0x5cc   :  { %1602 = vmatmul.mubr.msk.bf16.vlgmr.msra.gmra.mxu1 %vm33_vm0, %v400_v11 }
 0x5cd   :  { %1621 = vmatprep.mubr.msk.bf16.mxu1 %vm1833_vm1, %v1832_v15  ;;  %1614 = vmatpush3.bf16.msra.mxu1 %v1727_v60 }
 0x5ce   :  { %1615 = vmatprep.subr.bf16.mxu1 %v1832_v15 }
 0x5d1   :  { %1616 = vmatpush3.bf16.msra.mxu1 %v1728_v61 }
 0x5d2   :  { %1617 = vmatprep.subr.bf16.mxu1 %v1832_v15 }
 0x5d5   :  { %1618 = vmatpush3.bf16.msra.mxu1 %v1729_v62 }
 0x5d6   :  { %1619 = vmatprep.subr.bf16.mxu1 %v1832_v15 }
 0x5d9   :  { %1620 = vmatpush3.bf16.msra.mxu1 %v1730_v63 }
 0x5da   :  { %1639 = vmatprep.subr.bf16.mxu1 %v1832_v15 }
 0x68c   :  { %v448_v12 = vpop.f32.mrf.mxu1 }
 0x68d   :  { %v449_v13 = vadd.f32 %v448_v12, %v404_v16 }
 0x68e   :  { %v1603_v17 = vpop.f32.mrf.mxu1 }
 0x68f   :  { %v455_v18 = vadd.f32 %v449_v13, %v1925_v36 }
 0x690   :  { %v451_v19 = vpop.f32.mrf.mxu1 }
 0x691   :  { %v452_v20 = vadd.f32 %v451_v19, %v404_v16  ;;  %v457_v21 = vsel %vm33_vm0, %v455_v18, 0.0 }
 0x692   :  { %458 = vadd.xlane.f32.xlu0 %v457_v21  ;;  %v1604_v22 = vpop.f32.mrf.mxu1 }
 0x693   :  { %v456_v23 = vadd.f32 %v452_v20, %v1927_v37 }
 0x695   :  { %v460_v26 = vsel %vm33_vm0, %v456_v23, 0.0 }
 0x696   :  { %461 = vadd.xlane.f32.xlu1 %v460_v26 }
 0x71b   :  { %v459_v27 = vpop.xlane.xlu0 %458 }
 0x71c   :  { %v463_v28 = vmul.f32 0.03125, %v459_v27 }
 0x71e   :  { %v465_v29 = vsub.f32 %v455_v18, %v463_v28 }
 0x71f   :  { %v462_v31 = vpop.xlane.xlu1 %461 }
 0x720   :  { %v464_v32 = vmul.f32 0.03125, %v462_v31  ;;  %v467_v33 = vmul.f32 %v465_v29, %v465_v29  ;;  %v581_v31 = vsub.s32 5, %v1912_v24 }
 0x722   :  { %v466_v34 = vsub.f32 %v456_v23, %v464_v32  ;;  %v469_v36 = vsel %vm33_vm0, %v467_v33, 0.0  ;;  %v582_v32 = vrot.slane %v1937_v39, %v581_v31 }
 0x723   :  { %470 = vadd.xlane.f32.xlu0 %v469_v36 }
 0x724   :  { %v468_v35 = vmul.f32 %v466_v34, %v466_v34 }
 0x726   :  { %v472_v38 = vsel %vm33_vm0, %v468_v35, 0.0 }
 0x727   :  { %473 = vadd.xlane.f32.xlu0 %v472_v38 }
 0x7ac   :  { %v471_v40 = vpop.xlane.xlu0 %470 }
 0x7ad   :  { %v475_v41 = vmul.f32 0.03125, %v471_v40 }
 0x7af   :  { %v477_v37 = vadd.f32 1e-12, %v475_v41 }
 0x7b0   :  { %v474_v42 = vpop.xlane.xlu0 %473 }
 0x7b1   :  { %1767 = vrsqrt.f32 %v477_v37  ;;  %v476_v43 = vmul.f32 0.03125, %v474_v42 }
 0x7b3   :  { %v478_v44 = vadd.f32 1e-12, %v476_v43 }
 0x7b5   :  { %1769 = vrsqrt.f32 %v478_v44 }
 0x7be   :  { %v1768_v46 = vpop.eup %1767 }
 0x7bf   :  { %v481_v48 = vmul.f32 %v1768_v46, %v465_v29 }
 0x7c1   :  { %v487_v52 = vmul.f32 %v486_v49, %v481_v48 }
 0x7c2   :  { %v1770_v51 = vpop.eup %1769 }
 0x7c3   :  { %v482_v47 = vmul.f32 %v1770_v51, %v466_v34  ;;  %v493_v56 = vadd.f32 %v492_v53, %v487_v52 }
 0x7c5   :  { %v488_v55 = vmul.f32 %v486_v49, %v482_v47 }
 0x7c7   :  { %v494_v57 = vadd.f32 %v492_v53, %v488_v55 }
 0x7c9   :  { %v495_v58 = vpack.c.bf16 %v494_v57, %v493_v56 }
 0x7cb   :  { %1610 = vmatmul.mubr.msk.bf16.vlgmr.msra.gmra.mxu0 %vm33_vm0, %v495_v58  ;;  %v2075_v58 = vld [vmem:[%s2249_s4 + $0x20] ss:$8 sps:$4 sm:$0xff]  }
 0x7cc   :  { %1629 = vmatprep.mubr.msk.bf16.mxu0 %vm1833_vm1, %v1832_v15 }
 0x88b   :  { %v545_v2 = vpop.f32.mrf.mxu0 }
 0x88c   :  { %v546_v3 = vadd.f32 %v545_v2, %v499_v1 }
 0x88d   :  { %v1611_v4 = vpop.f32.mrf.mxu0 }
 0x88e   :  { %v554_v5 = vmul.f32 0.044715, %v546_v3  ;;  %v552_v22 = vmul.f32 0.5, %v546_v3 }
 0x88f   :  { %v548_v14 = vpop.f32.mrf.mxu0 }
 0x890   :  { %v556_v6 = vmul.f32 %v554_v5, %v546_v3  ;;  %v549_v7 = vadd.f32 %v548_v14, %v499_v1 }
 0x891   :  { %v1612_v8 = vpop.f32.mrf.mxu0 }
 0x892   :  { %v558_v9 = vmul.f32 %v556_v6, %v546_v3  ;;  %v555_v10 = vmul.f32 0.044715, %v549_v7  ;;  %v553_v23 = vmul.f32 0.5, %v549_v7  ;;  %v688_v6 = vsub.s32 7, %v1912_v24 }
 0x894   :  { %v560_v11 = vadd.f32 %v558_v9, %v546_v3  ;;  %v557_v16 = vmul.f32 %v555_v10, %v549_v7  ;;  %v682_v3 = vsub.s32 6, %v1912_v24  ;;  %v689_v10 = vrot.slane %v1937_v39, %v688_v6 }
 0x896   :  { %v562_v12 = vmul.f32 0.7978846, %v560_v11  ;;  %v559_v13 = vmul.f32 %v557_v16, %v549_v7  ;;  %v683_v14 = vrot.slane %v1937_v39, %v682_v3 }
 0x898   :  { %1771 = vtanh.f32 %v562_v12  ;;  %v561_v17 = vadd.f32 %v559_v13, %v549_v7 }
 0x89a   :  { %v563_v18 = vmul.f32 0.7978846, %v561_v17  ;;  %v2100_v17 = vld [vmem:[%s2248_s3 + $0x8] sm:$0xff] }
 0x89b   :  { %v703_v39 = vrot.slane %v2100_v17, %v1915_v25 }
 0x89c   :  { %1773 = vtanh.f32 %v563_v18 }
 0x8a5   :  { %v1772_v19 = vpop.eup %1771 }
 0x8a6   :  { %v566_v20 = vadd.f32 1.0, %v1772_v19 }
 0x8a8   :  { %v568_v27 = vmul.f32 %v566_v20, %v552_v22 }
 0x8a9   :  { %v1774_v21 = vpop.eup %1773 }
 0x8aa   :  { %v567_v26 = vadd.f32 1.0, %v1774_v21 }
 0x8ac   :  { %v569_v28 = vmul.f32 %v567_v26, %v553_v23 }
 0x8ae   :  { %v578_v29 = vpack.c.bf16 %v569_v28, %v568_v27 }
 0x8b0   :  { %1622 = vmatmul.mubr.msk.bf16.vlgmr.msra.gmra.mxu1 %vm607_vm3, %v578_v29 }
 0x8b1   :  { %1641 = vmatprep.mubr.msk.bf16.mxu1 %vm1833_vm1, %v1832_v15 }
 0x970   :  { %v645_v33 = vpop.f32.mrf.mxu1 }
 0x971   :  { %v646_v34 = vadd.f32 %v645_v33, %v582_v32 }
 0x972   :  { %v1623_v36 = vpop.f32.mrf.mxu1 }
 0x973   :  { %v652_v35 = vadd.f32 %v646_v34, %v493_v56 }
 0x974   :  { %v648_v38 = vpop.f32.mrf.mxu1 }
 0x975   :  { %v649_v40 = vadd.f32 %v648_v38, %v582_v32  ;;  %v654_v41 = vsel %vm33_vm0, %v652_v35, 0.0 }
 0x976   :  { %655 = vadd.xlane.f32.xlu0 %v654_v41  ;;  %v1624_v37 = vpop.f32.mrf.mxu1 }
 0x977   :  { %v653_v42 = vadd.f32 %v649_v40, %v494_v57  ;;  %v2069_v57 = vld [vmem:[%s2249_s4 + $0x30] ss:$8 sps:$4 sm:$0xff]  }
 0x978   :  { %1626 = vmatpush3.bf16.msra.mxu0 %v2069_v57 }
 0x979   :  { %v657_v43 = vsel %vm33_vm0, %v653_v42, 0.0  ;;  %1627 = vmatprep.subr.bf16.mxu0 %v1832_v15 }
 0x97a   :  { %658 = vadd.xlane.f32.xlu1 %v657_v43 }
 0x97c   :  { %1628 = vmatpush3.bf16.msra.mxu0 %v2075_v58 }
 0x97d   :  { %1633 = vmatprep.subr.bf16.mxu0 %v1832_v15 }
 0x9ff   :  { %v656_v44 = vpop.xlane.xlu0 %655 }
 0xa00   :  { %v660_v46 = vmul.f32 0.03125, %v656_v44 }
 0xa02   :  { %v662_v48 = vsub.f32 %v652_v35, %v660_v46 }
 0xa03   :  { %v659_v49 = vpop.xlane.xlu1 %658 }
 0xa04   :  { %v661_v51 = vmul.f32 0.03125, %v659_v49  ;;  %v664_v47 = vmul.f32 %v662_v48, %v662_v48 }
 0xa06   :  { %v663_v52 = vsub.f32 %v653_v42, %v661_v51  ;;  %v666_v53 = vsel %vm33_vm0, %v664_v47, 0.0 }
 0xa07   :  { %667 = vadd.xlane.f32.xlu0 %v666_v53 }
 0xa08   :  { %v665_v55 = vmul.f32 %v663_v52, %v663_v52 }
 0xa0a   :  { %v669_v56 = vsel %vm33_vm0, %v665_v55, 0.0 }
 0xa0b   :  { %670 = vadd.xlane.f32.xlu1 %v669_v56 }
 0xa90   :  { %v668_v60 = vpop.xlane.xlu0 %667 }
 0xa91   :  { %v672_v61 = vmul.f32 0.03125, %v668_v60 }
 0xa93   :  { %v674_v62 = vadd.f32 1e-12, %v672_v61 }
 0xa94   :  { %v671_v63 = vpop.xlane.xlu1 %670 }
 0xa95   :  { %1775 = vrsqrt.f32 %v674_v62  ;;  %v673_v1 = vmul.f32 0.03125, %v671_v63 }
 0xa97   :  { %v675_v2 = vadd.f32 1e-12, %v673_v1 }
 0xa99   :  { %1777 = vrsqrt.f32 %v675_v2 }
 0xaa2   :  { %v1776_v4 = vpop.eup %1775 }
 0xaa3   :  { %v678_v5 = vmul.f32 %v1776_v4, %v662_v48 }
 0xaa5   :  { %v684_v9 = vmul.f32 %v683_v14, %v678_v5 }
 0xaa6   :  { %v1778_v7 = vpop.eup %1777 }
 0xaa7   :  { %v679_v8 = vmul.f32 %v1778_v7, %v663_v52  ;;  %v2088_v16 = vadd.f32 %v689_v10, %v684_v9 }
 0xaa9   :  { %v685_v11 = vmul.f32 %v683_v14, %v679_v8 }
 0xaab   :  { %v2090_v12 = vadd.f32 %v689_v10, %v685_v11 }
 0xaad   :  { %v699_v13 = vpack.c.bf16 %v2090_v12, %v2088_v16 }
 0xaaf   :  { %1630 = vmatmul.mubr.msk.bf16.vlgmr.msra.gmra.mxu0 %vm33_vm0, %v699_v13 }
 0xab0   :  { %1635 = vmatprep.mubr.msk.bf16.mxu0 %vm1833_vm1, %v1832_v15 }
 0xb6f   :  { %v753_v18 = vpop.f32.mrf.mxu0 }
 0xb70   :  { %v754_v21 = vadd.f32 %v753_v18, %v703_v39 }
 0xb71   :  { %v1631_v19 = vpop.f32.mrf.mxu0 }
 0xb73   :  { %v756_v20 = vpop.f32.mrf.mxu0 }
 0xb74   :  { %v757_v22 = vadd.f32 %v756_v20, %v703_v39 }
 0xb75   :  { %v1632_v23 = vpop.f32.mrf.mxu0 }
 0xb76   :  { %v2104_v26 = vpack.c.bf16 %v757_v22, %v754_v21 }
 0xb78   :  { %887 = vrot.lane.b32.xlu1 %v2104_v26, %s1834_s12  ;;  %762 = vrot.lane.b32.xlu0 %v2104_v26, %s1835_s13 }
 0xb7c   :  { %885 = vrot.lane.b32.xlu1 %v2104_v26, %s1836_s14 }
 0xbea   :  { %v763_v27 = vpop.permute.xlu0 %762  ;;  %v888_v25 = vpop.permute.xlu1 %887 }
 0xbeb   :  { %v768_v28 = vsel %vm143_vm2, %v763_v27, 0  ;;  %v893_v29 = vsel %vm143_vm2, %v888_v25, 0 }
 0xbec   :  { %1634 = vmatpush3.bf16.xpose.msra.mxu0 %v768_v28 }
 0xbed   :  { %1645 = vmatprep.subr.bf16.mxu0 %v1832_v15 }
 0xbee   :  { %v886_v32 = vpop.permute.xlu1 %885 }
 0xbf3   :  { %1636 = vmatmul.mubr.msk.bf16.vlgmr.msra.gmra.mxu0 %vm143_vm2, %v2104_v26 }
 0xbf4   :  { %1646 = vmatpush3.bf16.xpose.msra.mxu0 %v893_v29  ;;  %1647 = vmatprep.mubr.msk.bf16.mxu0 %vm1833_vm1, %v1832_v15 }
 0xbf5   :  { %1657 = vmatprep.subr.bf16.mxu0 %v1832_v15 }
 0xbfb   :  { %1648 = vmatmul.mubr.msk.bf16.vlgmr.msra.gmra.mxu0 %vm143_vm2, %v886_v32 }
 0xbfc   :  { %1661 = vmatprep.mubr.msk.bf16.mxu0 %vm1833_vm1, %v1832_v15 }
 0xcb3   :  { %v804_v33 = vpop.f32.mrf.mxu0 }
 0xcb4   :  { %v811_v34 = vmul.f32 0.25, %v804_v33 }
 0xcb5   :  { %v1637_v36 = vpop.f32.mrf.mxu0 }
 0xcb6   :  { %v813_v35 = vadd.f32 %v811_v34, %v1963_v54 }
 0xcb7   :  { %v807_v38 = vpop.f32.mrf.mxu0 }
 0xcb8   :  { %v812_v40 = vmul.f32 0.25, %v807_v38  ;;  %v815_v41 = vsel %vm143_vm2, %v813_v35, -inf }
 0xcb9   :  { %816 = vmax.xlane.f32.xlu1 %v815_v41  ;;  %v1638_v37 = vpop.f32.mrf.mxu0 }
 0xcba   :  { %v814_v42 = vadd.f32 %v812_v40, %v1969_v59 }
 0xcbb   :  { %v929_v43 = vpop.f32.mrf.mxu0 }
 0xcbc   :  { %v936_v44 = vmul.f32 0.25, %v929_v43  ;;  %v818_v46 = vsel %vm143_vm2, %v814_v42, -inf }
 0xcbd   :  { %819 = vmax.xlane.f32.xlu0 %v818_v46  ;;  %v1649_v48 = vpop.f32.mrf.mxu0 }
 0xcbe   :  { %v938_v49 = vadd.f32 %v936_v44, %v1963_v54 }
 0xcbf   :  { %v932_v51 = vpop.f32.mrf.mxu0 }
 0xcc0   :  { %v937_v47 = vmul.f32 0.25, %v932_v51  ;;  %v940_v52 = vsel %vm143_vm2, %v938_v49, -inf }
 0xcc1   :  { %941 = vmax.xlane.f32.xlu0 %v940_v52  ;;  %v1650_v53 = vpop.f32.mrf.mxu0 }
 0xcc2   :  { %v939_v55 = vadd.f32 %v937_v47, %v1969_v59 }
 0xcc4   :  { %v943_v56 = vsel %vm143_vm2, %v939_v55, -inf }
 0xcc5   :  { %944 = vmax.xlane.f32.xlu0 %v943_v56 }
 0xd42   :  { %v817_v60 = vpop.xlane.xlu1 %816 }
 0xd43   :  { %v821_v61 = vsub.f32 %v813_v35, %v817_v60 }
 0xd45   :  { %v823_v62 = vmul.f32 1.442695, %v821_v61 }
 0xd46   :  { %v820_v63 = vpop.xlane.xlu0 %819 }
 0xd47   :  { %1779 = vpow2.f32 %v823_v62  ;;  %v822_v1 = vsub.f32 %v814_v42, %v820_v63 }
 0xd49   :  { %v825_v2 = vmul.f32 1.442695, %v822_v1 }
 0xd4a   :  { %v942_v4 = vpop.xlane.xlu0 %941 }
 0xd4b   :  { %1781 = vpow2.f32 %v825_v2  ;;  %v946_v54 = vsub.f32 %v938_v49, %v942_v4 }
 0xd4d   :  { %v948_v5 = vmul.f32 1.442695, %v946_v54 }
 0xd4e   :  { %v945_v14 = vpop.xlane.xlu0 %944 }
 0xd4f   :  { %1783 = vpow2.f32 %v948_v5  ;;  %v947_v7 = vsub.f32 %v939_v55, %v945_v14 }
 0xd51   :  { %v950_v8 = vmul.f32 1.442695, %v947_v7 }
 0xd53   :  { %1785 = vpow2.f32 %v950_v8 }
 0xd54   :  { %v1780_v59 = vpop.eup %1779 }
 0xd55   :  { %v827_v9 = vsel %vm143_vm2, %v1780_v59, 0.0 }
 0xd56   :  { %828 = vadd.xlane.f32.xlu1 %v827_v9 }
 0xd58   :  { %v1782_v10 = vpop.eup %1781 }
 0xd59   :  { %v830_v11 = vsel %vm143_vm2, %v1782_v10, 0.0 }
 0xd5a   :  { %831 = vadd.xlane.f32.xlu0 %v830_v11 }
 0xd5c   :  { %v1784_v13 = vpop.eup %1783 }
 0xd5d   :  { %v952_v18 = vsel %vm143_vm2, %v1784_v13, 0.0 }
 0xd5e   :  { %953 = vadd.xlane.f32.xlu1 %v952_v18 }
 0xd60   :  { %v1786_v39 = vpop.eup %1785 }
 0xd61   :  { %v955_v19 = vsel %vm143_vm2, %v1786_v39, 0.0 }
 0xd62   :  { %956 = vadd.xlane.f32.xlu0 %v955_v19 }
 0xd6f   :  { %838 = vrot.lane.b32.xlu1 %v2104_v26, %s1837_s1 }
 0xd73   :  { %1027 = vrot.lane.b32.xlu1 %v2069_v57, %s1839_s24 }
 0xd78   :  { %963 = vrot.lane.b32.xlu0 %v2104_v26, %s1838_s19 }
 0xddf   :  { %v829_v20 = vpop.xlane.xlu1 %828 }
 0xde0   :  { %1787 = vrcp.f32 %v829_v20  ;;  %v1736_v20 = vld [vmem:[%s2249_s4 + $0x24] ss:$8 sps:$4 sm:$0xff]  }
 0xde3   :  { %v832_v21 = vpop.xlane.xlu0 %831 }
 0xde4   :  { %1789 = vrcp.f32 %v832_v21 }
 0xde7   :  { %v954_v22 = vpop.xlane.xlu1 %953 }
 0xde8   :  { %1791 = vrcp.f32 %v954_v22 }
 0xdeb   :  { %v839_v23 = vpop.permute.xlu1 %838  ;;  %v957_v27 = vpop.xlane.xlu0 %956 }
 0xdec   :  { %1793 = vrcp.f32 %v957_v27  ;;  %1640 = vmatpush3.bf16.msra.mxu1 %v839_v23 }
 0xded   :  { %1651 = vmatprep.subr.bf16.mxu1 %v1832_v15  ;;  %v1788_v28 = vpop.eup %1787 }
 0xdee   :  { %v835_v29 = vmul.f32 %v1788_v28, %v1780_v59 }
 0xdef   :  { %v964_v33 = vpop.permute.xlu0 %963  ;;  %v1028_v40 = vpop.permute.xlu1 %1027 }
 0xdf0   :  { %1658 = vmatpush3.bf16.msra.mxu0 %v1028_v40 }
 0xdf1   :  { %v1790_v25 = vpop.eup %1789  ;;  %1659 = vmatprep.subr.bf16.mxu0 %v1832_v15 }
 0xdf2   :  { %v836_v32 = vmul.f32 %v1790_v25, %v1782_v10 }
 0xdf4   :  { %v837_v57 = vpack.c.bf16 %v836_v32, %v835_v29 }
 0xdf5   :  { %v1792_v26 = vpop.eup %1791 }
 0xdf6   :  { %1642 = vmatmul.mubr.msk.bf16.vlgmr.msra.gmra.mxu1 %vm143_vm2, %v837_v57  ;;  %v960_v36 = vmul.f32 %v1792_v26, %v1784_v13  ;;  %v1106_v57 = vrot.slane %v2100_v17, %v2023_v45 }
 0xdf7   :  { %1652 = vmatpush3.bf16.msra.mxu1 %v964_v33  ;;  %1653 = vmatprep.mubr.msk.bf16.mxu1 %vm1833_vm1, %v1832_v15 }
 0xdf8   :  { %1665 = vmatprep.subr.bf16.mxu1 %v1832_v15 }
 0xdf9   :  { %v1794_v34 = vpop.eup %1793 }
 0xdfa   :  { %v961_v35 = vmul.f32 %v1794_v34, %v1786_v39 }
 0xdfc   :  { %v962_v38 = vpack.c.bf16 %v961_v35, %v960_v36  ;;  %v1112_v36 = vrot.slane %v2100_v17, %v2028_v50 }
 0xdfe   :  { %1654 = vmatmul.mubr.msk.bf16.vlgmr.msra.gmra.mxu1 %vm143_vm2, %v962_v38 }
 0xdff   :  { %1669 = vmatprep.mubr.msk.bf16.mxu1 %vm1833_vm1, %v1832_v15 }
 0xeb6   :  { %v878_v41 = vpop.f32.mrf.mxu1 }
 0xeb8   :  { %v1643_v37 = vpop.f32.mrf.mxu1 }
 0xeb9   :  { %v1737_v37 = vld [vmem:[%s2250_s5 + $0x38] sm:$0xff]  }
 0xeba   :  { %v881_v42 = vpop.f32.mrf.mxu1 }
 0xebc   :  { %v1644_v43 = vpop.f32.mrf.mxu1 }
 0xebd   :  { %v1739_v43 = vld [vmem:[%s2250_s5 + $0x28] sm:$0xff]  }
 0xebe   :  { %v1003_v44 = vpop.f32.mrf.mxu1 }
 0xec0   :  { %v1655_v46 = vpop.f32.mrf.mxu1 }
 0xec1   :  { %v1119_v46 = vrot.slane %v2100_v17, %v498_v0 }
 0xec2   :  { %v1006_v48 = vpop.f32.mrf.mxu1 }
 0xec3   :  { %v1716_v49 = vpack.i.bf16 %v1006_v48, %v1003_v44  ;;  %v1740_v44 = vld [vmem:[%s2250_s5 + $0x20] sm:$0xff]  }
 0xec4   :  { %v1656_v51 = vpop.f32.mrf.mxu1 }
 0xec5   :  { %1717 = vrot.lane.b32.xlu1 %v1716_v49, %s1840_s25 }
 0xec9   :  { %1025 = vrot.lane.b32.xlu1 %v2075_v58, %s1839_s24  ;;  %v1024_v58 = vrot.slane %v2100_v17, %v1922_v30 }
 0xf37   :  { %v1718_v47 = vpop.permute.xlu1 %1717 }
 0xf38   :  { %v1720_v52 = vunpack.i.h.bf16 %v1718_v47  ;;  %v1719_v53 = vunpack.i.l.bf16 %v1718_v47 }
 0xf3a   :  { %v1019_v55 = vsel %vm143_vm2, %v881_v42, %v1720_v52  ;;  %v1018_v56 = vsel %vm143_vm2, %v878_v41, %v1719_v53  ;;  %v1738_v42 = vld [vmem:[%s2250_s5 + $0x30] sm:$0xff]  }
 0xf3b   :  { %v1026_v60 = vpop.permute.xlu1 %1025  ;;  %v1020_v61 = vpack.c.bf16 %v1019_v55, %v1018_v56 }
 0xf3c   :  { %1660 = vmatpush3.bf16.msra.mxu0 %v1026_v60 }
 0xf3d   :  { %1673 = vmatprep.subr.bf16.mxu0 %v1832_v15 }
 0xf3f   :  { %1662 = vmatmul.mubr.msk.bf16.vlgmr.msra.gmra.mxu0 %vm33_vm0, %v1020_v61 }
 0xf40   :  { %1681 = vmatprep.mubr.msk.bf16.mxu0 %vm1833_vm1, %v1832_v15  ;;  %1674 = vmatpush3.bf16.msra.mxu0 %v1737_v37 }
 0xf41   :  { %1675 = vmatprep.subr.bf16.mxu0 %v1832_v15 }
 0xf44   :  { %1676 = vmatpush3.bf16.msra.mxu0 %v1738_v42 }
 0xf45   :  { %1677 = vmatprep.subr.bf16.mxu0 %v1832_v15 }
 0xf48   :  { %1678 = vmatpush3.bf16.msra.mxu0 %v1739_v43 }
 0xf49   :  { %1679 = vmatprep.subr.bf16.mxu0 %v1832_v15 }
 0xf4c   :  { %1680 = vmatpush3.bf16.msra.mxu0 %v1740_v44 }
 0xfff   :  { %v1068_v62 = vpop.f32.mrf.mxu0 }
0x1000   :  { %v1069_v63 = vadd.f32 %v1068_v62, %v1024_v58 }
0x1001   :  { %v1663_v1 = vpop.f32.mrf.mxu0 }
0x1002   :  { %v1075_v2 = vadd.f32 %v1069_v63, %v2088_v16 }
0x1003   :  { %v1071_v4 = vpop.f32.mrf.mxu0 }
0x1004   :  { %v1072_v54 = vadd.f32 %v1071_v4, %v1024_v58  ;;  %v1077_v5 = vsel %vm33_vm0, %v1075_v2, 0.0 }
0x1005   :  { %1078 = vadd.xlane.f32.xlu0 %v1077_v5  ;;  %v1664_v14 = vpop.f32.mrf.mxu0 }
0x1006   :  { %v1076_v7 = vadd.f32 %v1072_v54, %v2090_v12  ;;  %v1735_v12 = vld [vmem:[%s2249_s4 + $0x34] ss:$8 sps:$4 sm:$0xff]  }
0x1007   :  { %1666 = vmatpush3.bf16.msra.mxu1 %v1735_v12 }
0x1008   :  { %v1080_v8 = vsel %vm33_vm0, %v1076_v7, 0.0  ;;  %1667 = vmatprep.subr.bf16.mxu1 %v1832_v15 }
0x1009   :  { %1081 = vadd.xlane.f32.xlu1 %v1080_v8 }
0x100b   :  { %1668 = vmatpush3.bf16.msra.mxu1 %v1736_v20 }
0x100c   :  { %1685 = vmatprep.subr.bf16.mxu1 %v1832_v15 }
0x108e   :  { %v1079_v59 = vpop.xlane.xlu0 %1078 }
0x108f   :  { %v1083_v9 = vmul.f32 0.03125, %v1079_v59 }
0x1091   :  { %v1085_v10 = vsub.f32 %v1075_v2, %v1083_v9 }
0x1092   :  { %v1082_v30 = vpop.xlane.xlu1 %1081 }
0x1093   :  { %v1084_v11 = vmul.f32 0.03125, %v1082_v30  ;;  %v1087_v13 = vmul.f32 %v1085_v10, %v1085_v10  ;;  %v1203_v30 = vrot.slane %v2100_v17, %v581_v31 }
0x1095   :  { %v1086_v18 = vsub.f32 %v1076_v7, %v1084_v11  ;;  %v1089_v16 = vsel %vm33_vm0, %v1087_v13, 0.0 }
0x1096   :  { %1090 = vadd.xlane.f32.xlu0 %v1089_v16 }
0x1097   :  { %v1088_v39 = vmul.f32 %v1086_v18, %v1086_v18 }
0x1099   :  { %v1092_v19 = vsel %vm33_vm0, %v1088_v39, 0.0 }
0x109a   :  { %1093 = vadd.xlane.f32.xlu0 %v1092_v19 }
0x111f   :  { %v1091_v21 = vpop.xlane.xlu0 %1090 }
0x1120   :  { %v1095_v22 = vmul.f32 0.03125, %v1091_v21 }
0x1122   :  { %v1097_v23 = vadd.f32 1e-12, %v1095_v22 }
0x1123   :  { %v1094_v27 = vpop.xlane.xlu0 %1093 }
0x1124   :  { %1795 = vrsqrt.f32 %v1097_v23  ;;  %v1096_v28 = vmul.f32 0.03125, %v1094_v27 }
0x1126   :  { %v1098_v25 = vadd.f32 1e-12, %v1096_v28 }
0x1128   :  { %1797 = vrsqrt.f32 %v1098_v25 }
0x1131   :  { %v1796_v29 = vpop.eup %1795 }
0x1132   :  { %v1101_v32 = vmul.f32 %v1796_v29, %v1085_v10 }
0x1134   :  { %v1107_v34 = vmul.f32 %v1106_v57, %v1101_v32 }
0x1135   :  { %v1798_v33 = vpop.eup %1797 }
0x1136   :  { %v1102_v26 = vmul.f32 %v1798_v33, %v1086_v18  ;;  %v1113_v38 = vadd.f32 %v1112_v36, %v1107_v34  ;;  %v1741_v34 = vld [vmem:[%s2251_s6 + $0x10] ss:$8 sps:$4 sm:$0xff]  }
0x1138   :  { %v1108_v35 = vmul.f32 %v1106_v57, %v1102_v26 }
0x113a   :  { %v1114_v40 = vadd.f32 %v1112_v36, %v1108_v35  ;;  %v1743_v36 = vld [vmem:[%s2251_s6] ss:$8 sps:$4 sm:$0xff]   ;;  %v1745_v35 = vld [vmem:[%s2251_s6 + $0x14] ss:$8 sps:$4 sm:$0xff]  }
0x113c   :  { %v1115_v41 = vpack.c.bf16 %v1114_v40, %v1113_v38 }
0x113e   :  { %1670 = vmatmul.mubr.msk.bf16.vlgmr.msra.gmra.mxu1 %vm33_vm0, %v1115_v41 }
0x113f   :  { %1689 = vmatprep.mubr.msk.bf16.mxu1 %vm1833_vm1, %v1832_v15  ;;  %1686 = vmatpush3.bf16.msra.mxu1 %v1741_v34 }
0x1140   :  { %1687 = vmatprep.subr.bf16.mxu1 %v1832_v15 }
0x1143   :  { %1688 = vmatpush3.bf16.msra.mxu1 %v1743_v36 }
0x1144   :  { %1693 = vmatprep.subr.bf16.mxu1 %v1832_v15 }
0x11fe   :  { %v1165_v48 = vpop.f32.mrf.mxu1 }
0x11ff   :  { %v1166_v49 = vadd.f32 %v1165_v48, %v1119_v46  ;;  %v1303_v48 = vrot.slane %v2100_v17, %v682_v3 }
0x1200   :  { %v1671_v51 = vpop.f32.mrf.mxu1 }
0x1201   :  { %v1174_v47 = vmul.f32 0.044715, %v1166_v49  ;;  %v1172_v14 = vmul.f32 0.5, %v1166_v49 }
0x1202   :  { %v1168_v52 = vpop.f32.mrf.mxu1 }
0x1203   :  { %v1176_v53 = vmul.f32 %v1174_v47, %v1166_v49  ;;  %v1169_v55 = vadd.f32 %v1168_v52, %v1119_v46 }
0x1204   :  { %v1672_v56 = vpop.f32.mrf.mxu1 }
0x1205   :  { %v1178_v60 = vmul.f32 %v1176_v53, %v1166_v49  ;;  %v1175_v61 = vmul.f32 0.044715, %v1169_v55  ;;  %v1173_v7 = vmul.f32 0.5, %v1169_v55 }
0x1207   :  { %v1180_v58 = vadd.f32 %v1178_v60, %v1166_v49  ;;  %v1177_v62 = vmul.f32 %v1175_v61, %v1169_v55 }
0x1209   :  { %v1182_v63 = vmul.f32 0.7978846, %v1180_v58  ;;  %v1179_v1 = vmul.f32 %v1177_v62, %v1169_v55 }
0x120b   :  { %1799 = vtanh.f32 %v1182_v63  ;;  %v1181_v2 = vadd.f32 %v1179_v1, %v1169_v55  ;;  %v1309_v55 = vrot.slane %v2100_v17, %v688_v6  ;;  %v1809_v17 = vld [vmem:[%s2247_s2] sm:$0xf]  ;;  %s1810_s2 = scalar_lea.vmem %s1457_s10, 32 }
0x120c   :  { %p1811_p0 = scmp.ne.s32.totalorder %s1457_s10, %s1810_s2  ;;  %p1816_p2 = scmp.lt.s32.totalorder %s1810_s2, %s1810_s2 }
0x120d   :  { %v1183_v4 = vmul.f32 0.7978846, %v1181_v2 }
0x120e   :  { %p1817_p3 = por %p1816_p2, %p1815_p1 }
0x120f   :  { %1801 = vtanh.f32 %v1183_v4  ;;  %v1325_v4 = vrot.slane %v1809_v17, %v2023_v45 }
0x1210   :  { %p1818_p4 = pnand %p1817_p3, %p1811_p0 }
0x1218   :  { %v1800_v54 = vpop.eup %1799 }
0x1219   :  { %v1186_v0 = vadd.f32 1.0, %v1800_v54 }
0x121b   :  { %v1188_v59 = vmul.f32 %v1186_v0, %v1172_v14 }
0x121c   :  { %v1802_v5 = vpop.eup %1801 }
0x121d   :  { %v1187_v8 = vadd.f32 1.0, %v1802_v5 }
0x121f   :  { %v1189_v9 = vmul.f32 %v1187_v8, %v1173_v7 }
0x1221   :  { %v1199_v10 = vpack.c.bf16 %v1189_v9, %v1188_v59 }
0x1223   :  { %1682 = vmatmul.mubr.msk.bf16.vlgmr.msra.gmra.mxu0 %vm607_vm3, %v1199_v10 }
0x12e3   :  { %v1265_v11 = vpop.f32.mrf.mxu0 }
0x12e4   :  { %v1266_v13 = vadd.f32 %v1265_v11, %v1203_v30 }
0x12e5   :  { %v1683_v18 = vpop.f32.mrf.mxu0 }
0x12e6   :  { %v1272_v16 = vadd.f32 %v1266_v13, %v1113_v38  ;;  %v1746_v38 = vld [vmem:[%s2251_s6 + $0x4] ss:$8 sps:$4 sm:$0xff]  }
0x12e7   :  { %v1268_v39 = vpop.f32.mrf.mxu0 }
0x12e8   :  { %v1269_v19 = vadd.f32 %v1268_v39, %v1203_v30  ;;  %v1274_v12 = vsel %vm33_vm0, %v1272_v16, 0.0 }
0x12e9   :  { %1275 = vadd.xlane.f32.xlu1 %v1274_v12  ;;  %v1684_v20 = vpop.f32.mrf.mxu0 }
0x12ea   :  { %v1273_v21 = vadd.f32 %v1269_v19, %v1114_v40 }
0x12ec   :  { %v1277_v22 = vsel %vm33_vm0, %v1273_v21, 0.0 }
0x12ed   :  { %1278 = vadd.xlane.f32.xlu0 %v1277_v22 }
0x1372   :  { %v1276_v23 = vpop.xlane.xlu1 %1275 }
0x1373   :  { %v1280_v27 = vmul.f32 0.03125, %v1276_v23 }
0x1375   :  { %v1282_v28 = vsub.f32 %v1272_v16, %v1280_v27 }
0x1376   :  { %v1279_v25 = vpop.xlane.xlu0 %1278 }
0x1377   :  { %v1281_v29 = vmul.f32 0.03125, %v1279_v25  ;;  %v1284_v31 = vmul.f32 %v1282_v28, %v1282_v28 }
0x1379   :  { %v1283_v32 = vsub.f32 %v1273_v21, %v1281_v29  ;;  %v1286_v57 = vsel %vm33_vm0, %v1284_v31, 0.0 }
0x137a   :  { %1287 = vadd.xlane.f32.xlu1 %v1286_v57 }
0x137b   :  { %v1285_v33 = vmul.f32 %v1283_v32, %v1283_v32 }
0x137d   :  { %v1289_v26 = vsel %vm33_vm0, %v1285_v33, 0.0 }
0x137e   :  { %1290 = vadd.xlane.f32.xlu0 %v1289_v26 }
0x138b   :  { %1399 = vrot.lane.b32.xlu1 %v1745_v35, %s1835_s13 }
0x138f   :  { %1393 = vrot.lane.b32.xlu1 %v1743_v36, %s1835_s13 }
0x1393   :  { %1395 = vrot.lane.b32.xlu1 %v1746_v38, %s1835_s13 }
0x1394   :  { %1397 = vrot.lane.b32.xlu0 %v1741_v34, %s1835_s13 }
0x1403   :  { %v1288_v40 = vpop.xlane.xlu1 %1287 }
0x1404   :  { %v1292_v41 = vmul.f32 0.03125, %v1288_v40 }
0x1406   :  { %v1294_v37 = vadd.f32 1e-12, %v1292_v41 }
0x1407   :  { %v1291_v42 = vpop.xlane.xlu0 %1290  ;;  %v1400_v3 = vpop.permute.xlu1 %1399 }
0x1408   :  { %1803 = vrsqrt.f32 %v1294_v37  ;;  %v1293_v43 = vmul.f32 0.03125, %v1291_v42 }
0x140a   :  { %v1295_v44 = vadd.f32 1e-12, %v1293_v43 }
0x140b   :  { %v1394_v63 = vpop.permute.xlu1 %1393  ;;  %v1398_v1 = vpop.permute.xlu0 %1397 }
0x140c   :  { %1805 = vrsqrt.f32 %v1295_v44  ;;  %v1403_v2 = vsel %vm1401_vm5, %v1398_v1, %v1400_v3 }
0x140f   :  { %v1396_v24 = vpop.permute.xlu1 %1395 }
0x1410   :  { %v1402_v6 = vsel %vm1401_vm5, %v1394_v63, %v1396_v24 }
0x1415   :  { %v1804_v46 = vpop.eup %1803 }
0x1416   :  { %v1298_v49 = vmul.f32 %v1804_v46, %v1282_v28 }
0x1418   :  { %v1304_v52 = vmul.f32 %v1303_v48, %v1298_v49 }
0x1419   :  { %v1806_v51 = vpop.eup %1805 }
0x141a   :  { %v1299_v47 = vmul.f32 %v1806_v51, %v1283_v32  ;;  %v1310_v60 = vadd.f32 %v1309_v55, %v1304_v52 }
0x141c   :  { %v1305_v53 = vmul.f32 %v1303_v48, %v1299_v47 }
0x141e   :  { %v1311_v56 = vadd.f32 %v1309_v55, %v1305_v53 }
0x1420   :  { %v1313_v61 = vrot.slane %v1311_v56, 7 }
0x1422   :  { %v1316_v58 = vsel %vm1315_vm4, %v1310_v60, %v1313_v61 }
0x1423   :  { %v1321_v62 = vpack.c.bf16 %v1316_v58, %v1316_v58 }
0x1425   :  { %1690 = vmatmul.mubr.msk.bf16.vlgmr.msra.gmra.mxu1 %vm33_vm0, %v1321_v62 }
0x1426   :  { %1697 = vmatprep.mubr.msk.bf16.mxu1 %vm1833_vm1, %v1832_v15  ;;  %1694 = vmatpush3.bf16.msra.mxu1 %v1403_v2 }
0x1427   :  { %1695 = vmatprep.subr.bf16.mxu1 %v1832_v15  ;;  %v1386_v15 = vrot.slane %v1809_v17, %v2028_v50 }
0x142a   :  { %1696 = vmatpush3.bf16.msra.mxu1 %v1402_v6 }
0x14e5   :  { %v1375_v54 = vpop.f32.mrf.mxu1 }
0x14e6   :  { %v1376_v0 = vadd.f32 %v1375_v54, %v1325_v4 }
0x14e7   :  { %v1691_v5 = vpop.f32.mrf.mxu1 }
0x14e8   :  { %1807 = vtanh.f32 %v1376_v0 }
0x14e9   :  { %v1378_v14 = vpop.f32.mrf.mxu1 }
0x14eb   :  { %v1692_v7 = vpop.f32.mrf.mxu1 }
0x14f5   :  { %v1808_v8 = vpop.eup %1807 }
0x14f6   :  { %v1382_v59 = vpack.c.bf16 %v1808_v8, %v1808_v8 }
0x14f8   :  { %1698 = vmatmul.mubr.msk.bf16.vlgmr.msra.gmra.mxu1 %vm33_vm0, %v1382_v59 }
0x15b8   :  { %v1443_v9 = vpop.f32.mrf.mxu1 }
0x15b9   :  { %v1444_v10 = vadd.f32 %v1443_v9, %v1386_v15 }
0x15ba   :  { %v1699_v30 = vpop.f32.mrf.mxu1 }
0x15bb   :  { %1449 = vst [vmem:[#allocation2] sm:$0x3] %v1444_v10 }
0x15bc   :  { %v1446_v45 = vpop.f32.mrf.mxu1 }
0x15bd   :  { %1821 = shalt.err (!%p1818_p4)
}
0x15be   :  { %1459 = dma.vmem_to_hbm [thread:$0]  %s1457_s10, 32, %s2252_s7, [#allocation3]   ;;  %v1700_v50 = vpop.f32.mrf.mxu1 }
0x15bf   :  { %1830 = dma.done.wait [#allocation3], 32  }
0x15c0   :  { %1831 = vsyncadd [#allocation3], 4294967264 }
0x15c1   :  { %1463 = vsyncpa [#allocation3], 1 }

</bundles_post_ra>
